<compile_context>
chip_gen: v7x
topology: tpu7x:2x2x1
jax: 0.10.0
libtpu: 0.0.40
codegen_flags: <defaults>
</compile_context>

<pallas_src>
import functools
import math

import jax
import jax.numpy as jnp
from jax import lax
from jax.experimental import pallas as pl
from jax.experimental.pallas import tpu as pltpu


NEG_BIAS = -10000.0


def _pick_tile(dim, target, align):
    """Largest tile <= target that is a multiple of `align` and divides `dim`
    (falls back to the full dim, which is always legal for a BlockSpec)."""
    if dim <= target:
        return dim
    t = (target // align) * align
    while t >= align:
        if dim % t == 0:
            return t
        t -= align
    return dim


# ----------------------------------------------------------------------------
# Tiled linear (+ optional fused ReLU):  (M,K) @ (K,N) + (1,N)
# ----------------------------------------------------------------------------
def _linear_kernel(x_ref, w_ref, b_ref, o_ref, acc_ref, *, act, n_k):
    @pl.when(pl.program_id(2) == 0)
    def _():
        acc_ref[...] = jnp.zeros_like(acc_ref)

    acc_ref[...] += jnp.dot(x_ref[...].astype(jnp.bfloat16),
                            w_ref[...].astype(jnp.bfloat16),
                            preferred_element_type=jnp.float32)

    @pl.when(pl.program_id(2) == n_k - 1)
    def _():
        y = acc_ref[...] + b_ref[...].astype(jnp.float32)
        if act == "relu":
            y = jnp.maximum(y, 0.0)
        o_ref[...] = y.astype(o_ref.dtype)


def _linear_kernel_single_k(x_ref, w_ref, b_ref, o_ref, *, act):
    y = jnp.dot(x_ref[...].astype(jnp.bfloat16),
                w_ref[...].astype(jnp.bfloat16),
                preferred_element_type=jnp.float32)
    y = y + b_ref[...].astype(jnp.float32)
    if act == "relu":
        y = jnp.maximum(y, 0.0)
    o_ref[...] = y.astype(o_ref.dtype)


def linear(x, w, b, act="none", tm=256, tn=256, tk=512):
    M, K = x.shape
    N = w.shape[1]
    tm = _pick_tile(M, tm, 8)
    tn = _pick_tile(N, tn, 128)
    tk = _pick_tile(K, tk, 128)
    n_k = K // tk

    if n_k == 1:
        # whole K fits a single tile -> no accumulator scratch needed
        return pl.pallas_call(
            functools.partial(_linear_kernel_single_k, act=act),
            out_shape=jax.ShapeDtypeStruct((M, N), jnp.float32),
            grid=(M // tm, N // tn),
            in_specs=[pl.BlockSpec((tm, K), lambda i, j: (i, 0)),
                      pl.BlockSpec((K, tn), lambda i, j: (0, j)),
                      pl.BlockSpec((1, tn), lambda i, j: (0, j))],
            out_specs=pl.BlockSpec((tm, tn), lambda i, j: (i, j)),
            compiler_params=pltpu.CompilerParams(
                dimension_semantics=("parallel", "parallel")),
        )(x, w, b)

    return pl.pallas_call(
        functools.partial(_linear_kernel, act=act, n_k=n_k),
        out_shape=jax.ShapeDtypeStruct((M, N), jnp.float32),
        grid=(M // tm, N // tn, n_k),
        in_specs=[pl.BlockSpec((tm, tk), lambda i, j, k: (i, k)),
                  pl.BlockSpec((tk, tn), lambda i, j, k: (k, j)),
                  pl.BlockSpec((1, tn), lambda i, j, k: (0, j))],
        out_specs=pl.BlockSpec((tm, tn), lambda i, j, k: (i, j)),
        scratch_shapes=[pltpu.VMEM((tm, tn), jnp.float32)],
        compiler_params=pltpu.CompilerParams(
            dimension_semantics=("parallel", "parallel", "arbitrary")),
    )(x, w, b)


# ----------------------------------------------------------------------------
# Fused residual-add + LayerNorm, tiled over rows
# ----------------------------------------------------------------------------
def _add_ln_kernel(x_ref, r_ref, g_ref, b_ref, o_ref, *, eps):
    x = x_ref[...].astype(jnp.float32) + r_ref[...].astype(jnp.float32)
    mean = jnp.mean(x, axis=-1, keepdims=True)
    var = jnp.mean(jnp.square(x - mean), axis=-1, keepdims=True)
    y = (x - mean) * lax.rsqrt(var + eps)
    o_ref[...] = (y * g_ref[...] + b_ref[...]).astype(o_ref.dtype)


def add_layer_norm(x, res, g, b, eps=1e-12, tm=256):
    # TODO(synk): confirm LayerNorm eps of the reference (hyunwoongko-style uses 1e-12).
    M, D = x.shape
    tm = _pick_tile(M, tm, 8)
    return pl.pallas_call(
        functools.partial(_add_ln_kernel, eps=eps),
        out_shape=jax.ShapeDtypeStruct((M, D), jnp.float32),
        grid=(M // tm,),
        in_specs=[pl.BlockSpec((tm, D), lambda i: (i, 0)),
                  pl.BlockSpec((tm, D), lambda i: (i, 0)),
                  pl.BlockSpec((1, D), lambda i: (0, 0)),
                  pl.BlockSpec((1, D), lambda i: (0, 0))],
        out_specs=pl.BlockSpec((tm, D), lambda i: (i, 0)),
        compiler_params=pltpu.CompilerParams(dimension_semantics=("parallel",)),
    )(x, res, g, b)


# ----------------------------------------------------------------------------
# Fused Infini-attention kernel: grid=(B, nseg); memory M/z in VMEM scratch.
# ----------------------------------------------------------------------------
def _infini_attn_kernel(q_ref, k_ref, v_ref, bias_ref, gate_ref, o_ref,
                        m_sc, z_sc, *, n_head, scale):
    seg = pl.program_id(1)

    @pl.when(seg == 0)                       # new batch element -> reset memory
    def _():
        m_sc[...] = jnp.zeros_like(m_sc)
        z_sc[...] = jnp.zeros_like(z_sc)

    q = q_ref[0, 0].astype(jnp.float32)      # (ss, D)
    k = k_ref[0, 0].astype(jnp.float32)
    v = v_ref[0, 0].astype(jnp.float32)
    bias = bias_ref[0, 0].astype(jnp.float32)   # (ss, ss), no head broadcast
    gate = gate_ref[...]                        # (1, D) per-head sigmoid gate

    ss, d_model = q.shape
    dh = d_model // n_head

    # sigma(x) = ELU(x) + 1
    sig_q = jnp.where(q > 0, q, jnp.exp(q) - 1.0) + 1.0
    sig_k = jnp.where(k > 0, k, jnp.exp(k) - 1.0) + 1.0

    dot_parts = []
    mem_parts = []
    for h in range(n_head):                  # heads sliced on the lane axis
        sl = slice(h * dh, (h + 1) * dh)
        q_h, k_h, v_h = q[:, sl], k[:, sl], v[:, sl]
        sq_h, sk_h = sig_q[:, sl], sig_k[:, sl]
        m_h = m_sc[h]                        # (dh, dh)
        z_h = z_sc[h]                        # (1, dh)

        # local (in-segment) softmax attention; no explicit K transpose
        s = lax.dot_general(q_h, k_h, (((1,), (1,)), ((), ())),
                            preferred_element_type=jnp.float32)
        s = s * scale + bias
        s_max = jnp.max(s, axis=-1, keepdims=True)
        p = jnp.exp(s - s_max)
        p_sum = jnp.sum(p, axis=-1, keepdims=True)
        a_dot = jnp.dot(p, v_h, preferred_element_type=jnp.float32)
        a_dot = a_dot * pl.reciprocal(p_sum, approx=True)

        # compressive-memory read (state from previous segments)
        num = jnp.dot(sq_h, m_h, preferred_element_type=jnp.float32)
        den = jnp.sum(sq_h * z_h, axis=-1, keepdims=True) + 1e-6
        a_mem = num * pl.reciprocal(den, approx=True)

        dot_parts.append(a_dot)
        mem_parts.append(a_mem)

        # linear memory update: M += sigma(K)^T V ; z += sum sigma(K)
        m_sc[h] = m_h + lax.dot_general(sk_h, v_h, (((0,), (0,)), ((), ())),
                                        preferred_element_type=jnp.float32)
        z_sc[h] = z_h + jnp.sum(sk_h, axis=0, keepdims=True)

    a_dot_all = jnp.concatenate(dot_parts, axis=-1)   # (ss, D) lane-dense
    a_mem_all = jnp.concatenate(mem_parts, axis=-1)
    out = gate * a_mem_all + (1.0 - gate) * a_dot_all
    o_ref[0, 0] = out.astype(o_ref.dtype)


def infini_attention(q, k, v, bias_seg, gate_row, n_head):
    """q, k, v: (B, nseg, ss, D); bias_seg: (B, nseg, ss, ss); gate: (1, D)."""
    B, nseg, ss, D = q.shape
    dh = D // n_head
    scale = 1.0 / math.sqrt(dh)
    return pl.pallas_call(
        functools.partial(_infini_attn_kernel, n_head=n_head, scale=scale),
        out_shape=jax.ShapeDtypeStruct((B, nseg, ss, D), jnp.float32),
        grid=(B, nseg),
        in_specs=[pl.BlockSpec((1, 1, ss, D), lambda b, s: (b, s, 0, 0)),
                  pl.BlockSpec((1, 1, ss, D), lambda b, s: (b, s, 0, 0)),
                  pl.BlockSpec((1, 1, ss, D), lambda b, s: (b, s, 0, 0)),
                  pl.BlockSpec((1, 1, ss, ss), lambda b, s: (b, s, 0, 0)),
                  pl.BlockSpec((1, D), lambda b, s: (0, 0))],
        out_specs=pl.BlockSpec((1, 1, ss, D), lambda b, s: (b, s, 0, 0)),
        scratch_shapes=[pltpu.VMEM((n_head, dh, dh), jnp.float32),   # memory M
                        pltpu.VMEM((n_head, 1, dh), jnp.float32)],   # norm z
        compiler_params=pltpu.CompilerParams(
            dimension_semantics=("parallel", "arbitrary")),
    )(q, k, v, bias_seg, gate_row)


# ----------------------------------------------------------------------------
# Model glue (plain JAX around the Pallas kernels)
# ----------------------------------------------------------------------------
def sinusoidal_pe(max_len, d_model):
    pos = jnp.arange(max_len, dtype=jnp.float32)[:, None]
    i = jnp.arange(0, d_model, 2, dtype=jnp.float32)
    angle = pos / jnp.power(10000.0, i / d_model)
    pe = jnp.zeros((max_len, d_model), jnp.float32)
    pe = pe.at[:, 0::2].set(jnp.sin(angle))
    pe = pe.at[:, 1::2].set(jnp.cos(angle))
    return pe


def make_segment_bias(mask, nseg, ss):
    """Compact per-segment additive bias (B, nseg, ss, ss); no head broadcast."""
    B = mask.shape[0]
    if mask.shape[2] == 1:                       # (B,1,1,S) key-pad mask
        key_ok = mask[:, 0, 0, :].reshape(B, nseg, 1, ss)
        seg_mask = jnp.broadcast_to(key_ok, (B, nseg, ss, ss))
    else:                                        # (B,1,S,S) pad & causal mask
        m = mask[:, 0].reshape(B, nseg, ss, nseg, ss)
        idx = jnp.arange(nseg)
        seg_mask = m[:, idx, :, idx, :].transpose(1, 0, 2, 3)
    return jnp.where(seg_mask, 0.0, NEG_BIAS).astype(jnp.float32)


def infini_mha(p, q2d, kv2d, B, Sq, Sk, mask, cfg, is_self):
    D, H, ss = cfg['d_model'], cfg['n_head'], cfg['segment_size']
    assert Sq % ss == 0 and Sk % ss == 0 and Sq // ss == Sk // ss, \
        "q and k/v must use the same segmentation"
    nseg = Sq // ss
    dh = D // H

    if is_self:                                   # fused QKV projection
        w = jnp.concatenate([p['w_q'], p['w_k'], p['w_v']], axis=1)
        b = jnp.concatenate([p['b_q'], p['b_k'], p['b_v']], axis=1)
        qkv = linear(q2d, w, b)
        q, k, v = qkv[:, :D], qkv[:, D:2 * D], qkv[:, 2 * D:]
    else:                                         # cross-attn: fused KV
        q = linear(q2d, p['w_q'], p['b_q'])
        wkv = jnp.concatenate([p['w_k'], p['w_v']], axis=1)
        bkv = jnp.concatenate([p['b_k'], p['b_v']], axis=1)
        kv = linear(kv2d, wkv, bkv)
        k, v = kv[:, :D], kv[:, D:]

    # pure reshapes -- heads never leave the lane axis, no transposes
    q = q.reshape(B, nseg, ss, D)
    k = k.reshape(B, nseg, ss, D)
    v = v.reshape(B, nseg, ss, D)

    bias_seg = make_segment_bias(mask, nseg, ss)
    gate_row = jnp.repeat(jax.nn.sigmoid(p['beta']), dh)[None, :]   # (1, D)

    out = infini_attention(q, k, v, bias_seg, gate_row, H)          # (B,nseg,ss,D)
    return linear(out.reshape(B * Sq, D), p['w_o'], p['b_o'])       # (B*Sq, D)


def ffn(lp, x2d):
    h = linear(x2d, lp['ffn_w1'], lp['ffn_b1'], act="relu")
    return linear(h, lp['ffn_w2'], lp['ffn_b2'])


def encoder_forward(params, src, src_mask, cfg):
    B, S = src.shape
    D = cfg['d_model']
    x = (params['enc_emb'][src] + params['pe'][:S][None]).reshape(B * S, D)
    for lp in params['enc_layers']:
        res = x
        a = infini_mha(lp['attn'], x, x, B, S, S, src_mask, cfg, True)
        x = add_layer_norm(a, res, lp['ln1_g'], lp['ln1_b'])
        res = x
        f = ffn(lp, x)
        x = add_layer_norm(f, res, lp['ln2_g'], lp['ln2_b'])
    return x                                      # (B*S, D)


def decoder_forward(params, trg, enc2d, Ssrc, trg_mask, src_mask, cfg):
    B, St = trg.shape
    D = cfg['d_model']
    x = (params['dec_emb'][trg] + params['pe'][:St][None]).reshape(B * St, D)
    for lp in params['dec_layers']:
        res = x
        a = infini_mha(lp['self_attn'], x, x, B, St, St, trg_mask, cfg, True)
        x = add_layer_norm(a, res, lp['ln1_g'], lp['ln1_b'])
        res = x
        c = infini_mha(lp['cross_attn'], x, enc2d, B, St, Ssrc, src_mask, cfg, False)
        x = add_layer_norm(c, res, lp['ln2_g'], lp['ln2_b'])
        res = x
        f = ffn(lp, x)
        x = add_layer_norm(f, res, lp['ln3_g'], lp['ln3_b'])

    # final projection: pad vocab to a multiple of 128 lanes, slice afterwards
    vocab = cfg['dec_voc_size']
    pad_n = (-vocab) % 128
    w_out = jnp.pad(params['out_w'], ((0, 0), (0, pad_n)))
    b_out = jnp.pad(params['out_b'], ((0, 0), (0, pad_n)))
    logits = linear(x, w_out, b_out)[:, :vocab]
    return logits.reshape(B, St, vocab)


def make_src_mask(src, pad_idx):
    return (src != pad_idx)[:, None, None, :]                 # (B,1,1,Ssrc)


def make_trg_mask(trg, pad_idx):
    St = trg.shape[1]
    pad_mask = (trg != pad_idx)[:, None, :, None]             # (B,1,St,1)
    sub_mask = jnp.tril(jnp.ones((St, St), dtype=jnp.bool_))
    return pad_mask & sub_mask[None, None]                    # (B,1,St,St)


def transformer_forward(params, src, trg, cfg):
    src_mask = make_src_mask(src, cfg['src_pad_idx'])
    trg_mask = make_trg_mask(trg, cfg['trg_pad_idx'])
    enc2d = encoder_forward(params, src, src_mask, cfg)
    return decoder_forward(params, trg, enc2d, src.shape[1],
                           trg_mask, src_mask, cfg)


# ----------------------------------------------------------------------------
# Deterministic parameter initialization (synthetic weights, no checkpoint)
# ----------------------------------------------------------------------------
def _dense(key, fan_in, fan_out):
    return jax.random.normal(key, (fan_in, fan_out), jnp.float32) * 0.02


def _init_attn(key, d_model, n_head):
    ks = jax.random.split(key, 4)
    zb = jnp.zeros((1, d_model), jnp.float32)
    return {'w_q': _dense(ks[0], d_model, d_model), 'b_q': zb,
            'w_k': _dense(ks[1], d_model, d_model), 'b_k': zb,
            'w_v': _dense(ks[2], d_model, d_model), 'b_v': zb,
            'w_o': _dense(ks[3], d_model, d_model), 'b_o': zb,
            'beta': jnp.zeros((n_head,), jnp.float32)}


def init_params(key, cfg):
    D, F, H = cfg['d_model'], cfg['ffn_hidden'], cfg['n_head']
    keys = iter(jax.random.split(key, 64))
    params = {
        'enc_emb': _dense(next(keys), cfg['enc_voc_size'], D),
        'dec_emb': _dense(next(keys), cfg['dec_voc_size'], D),
        'pe': sinusoidal_pe(cfg['max_len'], D),
        'enc_layers': [],
        'dec_layers': [],
        'out_w': _dense(next(keys), D, cfg['dec_voc_size']),
        'out_b': jnp.zeros((1, cfg['dec_voc_size']), jnp.float32),
    }
    ones, zeros = jnp.ones((1, D), jnp.float32), jnp.zeros((1, D), jnp.float32)
    for _ in range(cfg['n_layers']):
        params['enc_layers'].append({
            'attn': _init_attn(next(keys), D, H),
            'ln1_g': ones, 'ln1_b': zeros,
            'ffn_w1': _dense(next(keys), D, F), 'ffn_b1': jnp.zeros((1, F), jnp.float32),
            'ffn_w2': _dense(next(keys), F, D), 'ffn_b2': zeros,
            'ln2_g': ones, 'ln2_b': zeros,
        })
        params['dec_layers'].append({
            'self_attn': _init_attn(next(keys), D, H),
            'ln1_g': ones, 'ln1_b': zeros,
            'cross_attn': _init_attn(next(keys), D, H),
            'ln2_g': ones, 'ln2_b': zeros,
            'ffn_w1': _dense(next(keys), D, F), 'ffn_b1': jnp.zeros((1, F), jnp.float32),
            'ffn_w2': _dense(next(keys), F, D), 'ffn_b2': zeros,
            'ln3_g': ones, 'ln3_b': zeros,
        })
    return params


# ----------------------------------------------------------------------------
if __name__ == "__main__":
    # TODO(synk): dropout (drop_prob) is inactive (inference forward); it is an identity here.
    cfg = dict(src_pad_idx=0, trg_pad_idx=0, trg_sos_idx=1,
               enc_voc_size=50, dec_voc_size=60,
               d_model=32, n_head=4, max_len=16, ffn_hidden=64,
               n_layers=2, drop_prob=0.0,
               batch_size=2, segment_size=4)

    key = jax.random.PRNGKey(0)
    k_src, k_trg, k_param = jax.random.split(key, 3)

    B, S = cfg['batch_size'], 8
    src = jax.random.randint(k_src, (B, S), 2, cfg['enc_voc_size'], dtype=jnp.int32)
    trg = jax.random.randint(k_trg, (B, S), 2, cfg['dec_voc_size'], dtype=jnp.int32)
    # inject some padding tokens so the masks are exercised
    src = src.at[0, -2:].set(cfg['src_pad_idx'])
    trg = trg.at[1, -3:].set(cfg['trg_pad_idx'])

    params = init_params(k_param, cfg)

    fwd = jax.jit(lambda p, s, t: transformer_forward(p, s, t, cfg))
    out = fwd(params, src, trg)
    out = jax.block_until_ready(out)

    assert out.shape == (B, S, cfg['dec_voc_size'])
    assert jnp.all(jnp.isfinite(out))
    print("KERNEL_OK")
</pallas_src>

<mosaic_0001>
module attributes {stable_mosaic.version = 11 : i64} {
  func.func @_linear_kernel_single_k(%arg0: i32, %arg1: i32, %arg2: memref<16x32xf32, #tpu.memory_space<vmem>>, %arg3: memref<32x96xf32, #tpu.memory_space<vmem>>, %arg4: memref<1x96xf32, #tpu.memory_space<vmem>>, %arg5: memref<16x96xf32, #tpu.memory_space<vmem>>) attributes {dimension_semantics = [#tpu.dimension_semantics<parallel>, #tpu.dimension_semantics<parallel>], iteration_bounds = array<i64: 1, 1>, scalar_prefetch = 0 : i64, scratch_operands = 0 : i64, tpu.core_type = #tpu.core_type<tc>, window_params = [{transform_indices = @transform_0, window_bounds = array<i64: 16, 32>}, {transform_indices = @transform_1, window_bounds = array<i64: 32, 96>}, {transform_indices = @transform_2, window_bounds = array<i64: 1, 96>}, {transform_indices = @transform_3, window_bounds = array<i64: 16, 96>}]} {
    %c0 = arith.constant 0 : index
    %c0_0 = arith.constant 0 : index
    %0 = vector.load %arg2[%c0, %c0_0] : memref<16x32xf32, #tpu.memory_space<vmem>>, vector<16x32xf32>
    %1 = arith.truncf %0 : vector<16x32xf32> to vector<16x32xbf16>
    %c0_1 = arith.constant 0 : index
    %c0_2 = arith.constant 0 : index
    %2 = vector.load %arg3[%c0_1, %c0_2] : memref<32x96xf32, #tpu.memory_space<vmem>>, vector<32x96xf32>
    %3 = arith.truncf %2 : vector<32x96xf32> to vector<32x96xbf16>
    %cst = arith.constant dense<0.000000e+00> : vector<16x96xf32>
    %4 = tpu.matmul %1, %3, %cst {dimension_numbers = #tpu.dot_dimension_numbers<[1], [0], [0], [1], [0, 0, 1, 1], [], []>} : vector<16x32xbf16>, vector<32x96xbf16>, vector<16x96xf32> -> vector<16x96xf32>
    %c0_3 = arith.constant 0 : index
    %c0_4 = arith.constant 0 : index
    %5 = vector.load %arg4[%c0_3, %c0_4] : memref<1x96xf32, #tpu.memory_space<vmem>>, vector<1x96xf32>
    %6 = vector.broadcast %5 : vector<1x96xf32> to vector<16x96xf32>
    %7 = arith.addf %4, %6 : vector<16x96xf32>
    %c0_5 = arith.constant 0 : index
    %c0_6 = arith.constant 0 : index
    %8 = vector.load %arg5[%c0_5, %c0_6] : memref<16x96xf32, #tpu.memory_space<vmem>>, vector<16x96xf32>
    tpu.vector_store %arg5[%c0_5, %c0_6], %7 {strides = array<i32>} : memref<16x96xf32, #tpu.memory_space<vmem>>, vector<16x96xf32>,
    return
  }
  func.func @transform_0(%arg0: i32, %arg1: i32) -> (i32, i32) {
    %c0_i32 = arith.constant 0 : i32
    %c0_i32_0 = arith.constant 0 : i32
    return %arg0, %c0_i32 : i32, i32
  }
  func.func @transform_1(%arg0: i32, %arg1: i32) -> (i32, i32) {
    %c0_i32 = arith.constant 0 : i32
    %c0_i32_0 = arith.constant 0 : i32
    return %c0_i32, %arg1 : i32, i32
  }
  func.func @transform_2(%arg0: i32, %arg1: i32) -> (i32, i32) {
    %c0_i32 = arith.constant 0 : i32
    %c0_i32_0 = arith.constant 0 : i32
    return %c0_i32, %arg1 : i32, i32
  }
  func.func @transform_3(%arg0: i32, %arg1: i32) -> (i32, i32) {
    %c0_i32 = arith.constant 0 : i32
    return %arg0, %arg1 : i32, i32
  }
}

module attributes {stable_mosaic.version = 11 : i64} {
  func.func @_linear_kernel_single_k(%arg0: i32, %arg1: i32, %arg2: memref<16x32xf32, #tpu.memory_space<vmem>>, %arg3: memref<32x32xf32, #tpu.memory_space<vmem>>, %arg4: memref<1x32xf32, #tpu.memory_space<vmem>>, %arg5: memref<16x32xf32, #tpu.memory_space<vmem>>) attributes {dimension_semantics = [#tpu.dimension_semantics<parallel>, #tpu.dimension_semantics<parallel>], iteration_bounds = array<i64: 1, 1>, scalar_prefetch = 0 : i64, scratch_operands = 0 : i64, tpu.core_type = #tpu.core_type<tc>, window_params = [{transform_indices = @transform_0, window_bounds = array<i64: 16, 32>}, {transform_indices = @transform_1, window_bounds = array<i64: 32, 32>}, {transform_indices = @transform_2, window_bounds = array<i64: 1, 32>}, {transform_indices = @transform_3, window_bounds = array<i64: 16, 32>}]} {
    %c0 = arith.constant 0 : index
    %c0_0 = arith.constant 0 : index
    %0 = vector.load %arg2[%c0, %c0_0] : memref<16x32xf32, #tpu.memory_space<vmem>>, vector<16x32xf32>
    %1 = arith.truncf %0 : vector<16x32xf32> to vector<16x32xbf16>
    %c0_1 = arith.constant 0 : index
    %c0_2 = arith.constant 0 : index
    %2 = vector.load %arg3[%c0_1, %c0_2] : memref<32x32xf32, #tpu.memory_space<vmem>>, vector<32x32xf32>
    %3 = arith.truncf %2 : vector<32x32xf32> to vector<32x32xbf16>
    %cst = arith.constant dense<0.000000e+00> : vector<16x32xf32>
    %4 = tpu.matmul %1, %3, %cst {dimension_numbers = #tpu.dot_dimension_numbers<[1], [0], [0], [1], [0, 0, 1, 1], [], []>} : vector<16x32xbf16>, vector<32x32xbf16>, vector<16x32xf32> -> vector<16x32xf32>
    %c0_3 = arith.constant 0 : index
    %c0_4 = arith.constant 0 : index
    %5 = vector.load %arg4[%c0_3, %c0_4] : memref<1x32xf32, #tpu.memory_space<vmem>>, vector<1x32xf32>
    %6 = vector.broadcast %5 : vector<1x32xf32> to vector<16x32xf32>
    %7 = arith.addf %4, %6 : vector<16x32xf32>
    %c0_5 = arith.constant 0 : index
    %c0_6 = arith.constant 0 : index
    %8 = vector.load %arg5[%c0_5, %c0_6] : memref<16x32xf32, #tpu.memory_space<vmem>>, vector<16x32xf32>
    tpu.vector_store %arg5[%c0_5, %c0_6], %7 {strides = array<i32>} : memref<16x32xf32, #tpu.memory_space<vmem>>, vector<16x32xf32>,
    return
  }
  func.func @transform_0(%arg0: i32, %arg1: i32) -> (i32, i32) {
    %c0_i32 = arith.constant 0 : i32
    %c0_i32_0 = arith.constant 0 : i32
    return %arg0, %c0_i32 : i32, i32
  }
  func.func @transform_1(%arg0: i32, %arg1: i32) -> (i32, i32) {
    %c0_i32 = arith.constant 0 : i32
    %c0_i32_0 = arith.constant 0 : i32
    return %c0_i32, %arg1 : i32, i32
  }
  func.func @transform_2(%arg0: i32, %arg1: i32) -> (i32, i32) {
    %c0_i32 = arith.constant 0 : i32
    %c0_i32_0 = arith.constant 0 : i32
    return %c0_i32, %arg1 : i32, i32
  }
  func.func @transform_3(%arg0: i32, %arg1: i32) -> (i32, i32) {
    %c0_i32 = arith.constant 0 : i32
    return %arg0, %arg1 : i32, i32
  }
}

module attributes {stable_mosaic.version = 11 : i64} {
  func.func @_add_ln_kernel(%arg0: i32, %arg1: memref<16x32xf32, #tpu.memory_space<vmem>>, %arg2: memref<16x32xf32, #tpu.memory_space<vmem>>, %arg3: memref<1x32xf32, #tpu.memory_space<vmem>>, %arg4: memref<1x32xf32, #tpu.memory_space<vmem>>, %arg5: memref<16x32xf32, #tpu.memory_space<vmem>>) attributes {dimension_semantics = [#tpu.dimension_semantics<parallel>], iteration_bounds = array<i64: 1>, scalar_prefetch = 0 : i64, scratch_operands = 0 : i64, tpu.core_type = #tpu.core_type<tc>, window_params = [{transform_indices = @transform_0, window_bounds = array<i64: 16, 32>}, {transform_indices = @transform_1, window_bounds = array<i64: 16, 32>}, {pipeline_mode = #tpu.pipeline_mode<synchronous>, transform_indices = @transform_2, window_bounds = array<i64: 1, 32>}, {pipeline_mode = #tpu.pipeline_mode<synchronous>, transform_indices = @transform_3, window_bounds = array<i64: 1, 32>}, {transform_indices = @transform_4, window_bounds = array<i64: 16, 32>}]} {
    %c0 = arith.constant 0 : index
    %c0_0 = arith.constant 0 : index
    %0 = vector.load %arg1[%c0, %c0_0] : memref<16x32xf32, #tpu.memory_space<vmem>>, vector<16x32xf32>
    %c0_1 = arith.constant 0 : index
    %c0_2 = arith.constant 0 : index
    %1 = vector.load %arg2[%c0_1, %c0_2] : memref<16x32xf32, #tpu.memory_space<vmem>>, vector<16x32xf32>
    %2 = arith.addf %0, %1 : vector<16x32xf32>
    %cst = arith.constant dense<0.000000e+00> : vector<16xf32>
    %3 = vector.multi_reduction <add>, %2, %cst [1] : vector<16x32xf32> to vector<16xf32>
    %4 = vector.shape_cast %3 : vector<16xf32> to vector<16x1xf32>
    %cst_3 = arith.constant 3.200000e+01 : f32
    %5 = vector.broadcast %cst_3 : f32 to vector<16x1xf32>
    %6 = arith.divf %4, %5 : vector<16x1xf32>
    %7 = vector.broadcast %6 : vector<16x1xf32> to vector<16x32xf32>
    %8 = arith.subf %2, %7 : vector<16x32xf32>
    %9 = arith.mulf %8, %8 : vector<16x32xf32>
    %cst_4 = arith.constant dense<0.000000e+00> : vector<16xf32>
    %10 = vector.multi_reduction <add>, %9, %cst_4 [1] : vector<16x32xf32> to vector<16xf32>
    %11 = vector.shape_cast %10 : vector<16xf32> to vector<16x1xf32>
    %cst_5 = arith.constant 3.200000e+01 : f32
    %12 = vector.broadcast %cst_5 : f32 to vector<16x1xf32>
    %13 = arith.divf %11, %12 : vector<16x1xf32>
    %14 = vector.broadcast %6 : vector<16x1xf32> to vector<16x32xf32>
    %15 = arith.subf %2, %14 : vector<16x32xf32>
    %cst_6 = arith.constant 9.99999996E-13 : f32
    %16 = vector.broadcast %cst_6 : f32 to vector<16x1xf32>
    %17 = arith.addf %13, %16 : vector<16x1xf32>
    %18 = math.rsqrt %17 : vector<16x1xf32>
    %19 = vector.broadcast %18 : vector<16x1xf32> to vector<16x32xf32>
    %20 = arith.mulf %15, %19 : vector<16x32xf32>
    %c0_7 = arith.constant 0 : index
    %c0_8 = arith.constant 0 : index
    %21 = vector.load %arg3[%c0_7, %c0_8] : memref<1x32xf32, #tpu.memory_space<vmem>>, vector<1x32xf32>
    %22 = vector.broadcast %21 : vector<1x32xf32> to vector<16x32xf32>
    %23 = arith.mulf %20, %22 : vector<16x32xf32>
    %c0_9 = arith.constant 0 : index
    %c0_10 = arith.constant 0 : index
    %24 = vector.load %arg4[%c0_9, %c0_10] : memref<1x32xf32, #tpu.memory_space<vmem>>, vector<1x32xf32>
    %25 = vector.broadcast %24 : vector<1x32xf32> to vector<16x32xf32>
    %26 = arith.addf %23, %25 : vector<16x32xf32>
    %c0_11 = arith.constant 0 : index
    %c0_12 = arith.constant 0 : index
    %27 = vector.load %arg5[%c0_11, %c0_12] : memref<16x32xf32, #tpu.memory_space<vmem>>, vector<16x32xf32>
    tpu.vector_store %arg5[%c0_11, %c0_12], %26 {strides = array<i32>} : memref<16x32xf32, #tpu.memory_space<vmem>>, vector<16x32xf32>,
    return
  }
  func.func @transform_0(%arg0: i32) -> (i32, i32) {
    %c0_i32 = arith.constant 0 : i32
    %c0_i32_0 = arith.constant 0 : i32
    return %arg0, %c0_i32 : i32, i32
  }
  func.func @transform_1(%arg0: i32) -> (i32, i32) {
    %c0_i32 = arith.constant 0 : i32
    %c0_i32_0 = arith.constant 0 : i32
    return %arg0, %c0_i32 : i32, i32
  }
  func.func @transform_2(%arg0: i32) -> (i32, i32) {
    %c0_i32 = arith.constant 0 : i32
    %c0_i32_0 = arith.constant 0 : i32
    %c0_i32_1 = arith.constant 0 : i32
    return %c0_i32, %c0_i32_0 : i32, i32
  }
  func.func @transform_3(%arg0: i32) -> (i32, i32) {
    %c0_i32 = arith.constant 0 : i32
    %c0_i32_0 = arith.constant 0 : i32
    %c0_i32_1 = arith.constant 0 : i32
    return %c0_i32, %c0_i32_0 : i32, i32
  }
  func.func @transform_4(%arg0: i32) -> (i32, i32) {
    %c0_i32 = arith.constant 0 : i32
    %c0_i32_0 = arith.constant 0 : i32
    return %arg0, %c0_i32 : i32, i32
  }
}

module attributes {stable_mosaic.version = 11 : i64} {
  func.func @_infini_attn_kernel(%arg0: i32, %arg1: i32, %arg2: memref<1x1x4x32xf32, #tpu.memory_space<vmem>>, %arg3: memref<1x1x4x32xf32, #tpu.memory_space<vmem>>, %arg4: memref<1x1x4x32xf32, #tpu.memory_space<vmem>>, %arg5: memref<1x1x4x4xf32, #tpu.memory_space<vmem>>, %arg6: memref<1x32xf32, #tpu.memory_space<vmem>>, %arg7: memref<1x1x4x32xf32, #tpu.memory_space<vmem>>, %arg8: memref<4x8x8xf32, #tpu.memory_space<vmem>>, %arg9: memref<4x1x8xf32, #tpu.memory_space<vmem>>) attributes {dimension_semantics = [#tpu.dimension_semantics<parallel>, #tpu.dimension_semantics<arbitrary>], iteration_bounds = array<i64: 2, 2>, scalar_prefetch = 0 : i64, scratch_operands = 2 : i64, tpu.core_type = #tpu.core_type<tc>, window_params = [{transform_indices = @transform_0, window_bounds = array<i64: 1, 1, 4, 32>}, {transform_indices = @transform_1, window_bounds = array<i64: 1, 1, 4, 32>}, {transform_indices = @transform_2, window_bounds = array<i64: 1, 1, 4, 32>}, {transform_indices = @transform_3, window_bounds = array<i64: 1, 1, 4, 4>}, {pipeline_mode = #tpu.pipeline_mode<synchronous>, transform_indices = @transform_4, window_bounds = array<i64: 1, 32>}, {transform_indices = @transform_5, window_bounds = array<i64: 1, 1, 4, 32>}]} {
    %c0_i32 = arith.constant 0 : i32
    %0 = arith.cmpi eq, %arg1, %c0_i32 : i32
    %1 = arith.extui %0 : i1 to i32
    %c0_i32_0 = arith.constant 0 : i32
    %2 = arith.cmpi ne, %1, %c0_i32_0 : i32
    scf.if %2 {
      %cst_113 = arith.constant 0.000000e+00 : f32
      %220 = vector.broadcast %cst_113 : f32 to vector<4x8x8xf32>
      %c0_114 = arith.constant 0 : index
      %c0_115 = arith.constant 0 : index
      %c0_116 = arith.constant 0 : index
      %221 = vector.load %arg8[%c0_114, %c0_115, %c0_116] : memref<4x8x8xf32, #tpu.memory_space<vmem>>, vector<4x8x8xf32>
      tpu.vector_store %arg8[%c0_114, %c0_115, %c0_116], %220 {strides = array<i32>} : memref<4x8x8xf32, #tpu.memory_space<vmem>>, vector<4x8x8xf32>,
      %cst_117 = arith.constant 0.000000e+00 : f32
      %222 = vector.broadcast %cst_117 : f32 to vector<4x1x8xf32>
      %c0_118 = arith.constant 0 : index
      %c0_119 = arith.constant 0 : index
      %c0_120 = arith.constant 0 : index
      %223 = vector.load %arg9[%c0_118, %c0_119, %c0_120] : memref<4x1x8xf32, #tpu.memory_space<vmem>>, vector<4x1x8xf32>
      tpu.vector_store %arg9[%c0_118, %c0_119, %c0_120], %222 {strides = array<i32>} : memref<4x1x8xf32, #tpu.memory_space<vmem>>, vector<4x1x8xf32>,
    } else {
    }
    %c0 = arith.constant 0 : index
    %c0_1 = arith.constant 0 : index
    %c0_2 = arith.constant 0 : index
    %c0_3 = arith.constant 0 : index
    %3 = vector.load %arg2[%c0, %c0_1, %c0_2, %c0_3] : memref<1x1x4x32xf32, #tpu.memory_space<vmem>>, vector<1x1x4x32xf32>
    %4 = vector.shape_cast %3 : vector<1x1x4x32xf32> to vector<4x32xf32>
    %c0_4 = arith.constant 0 : index
    %c0_5 = arith.constant 0 : index
    %c0_6 = arith.constant 0 : index
    %c0_7 = arith.constant 0 : index
    %5 = vector.load %arg3[%c0_4, %c0_5, %c0_6, %c0_7] : memref<1x1x4x32xf32, #tpu.memory_space<vmem>>, vector<1x1x4x32xf32>
    %6 = vector.shape_cast %5 : vector<1x1x4x32xf32> to vector<4x32xf32>
    %c0_8 = arith.constant 0 : index
    %c0_9 = arith.constant 0 : index
    %c0_10 = arith.constant 0 : index
    %c0_11 = arith.constant 0 : index
    %7 = vector.load %arg4[%c0_8, %c0_9, %c0_10, %c0_11] : memref<1x1x4x32xf32, #tpu.memory_space<vmem>>, vector<1x1x4x32xf32>
    %8 = vector.shape_cast %7 : vector<1x1x4x32xf32> to vector<4x32xf32>
    %c0_12 = arith.constant 0 : index
    %c0_13 = arith.constant 0 : index
    %c0_14 = arith.constant 0 : index
    %c0_15 = arith.constant 0 : index
    %9 = vector.load %arg5[%c0_12, %c0_13, %c0_14, %c0_15] : memref<1x1x4x4xf32, #tpu.memory_space<vmem>>, vector<1x1x4x4xf32>
    %10 = vector.shape_cast %9 : vector<1x1x4x4xf32> to vector<4x4xf32>
    %c0_16 = arith.constant 0 : index
    %c0_17 = arith.constant 0 : index
    %11 = vector.load %arg6[%c0_16, %c0_17] : memref<1x32xf32, #tpu.memory_space<vmem>>, vector<1x32xf32>
    %cst = arith.constant 0.000000e+00 : f32
    %12 = vector.broadcast %cst : f32 to vector<4x32xf32>
    %13 = arith.cmpf ogt, %4, %12 : vector<4x32xf32>
    %14 = math.exp %4 : vector<4x32xf32>
    %cst_18 = arith.constant 1.000000e+00 : f32
    %15 = vector.broadcast %cst_18 : f32 to vector<4x32xf32>
    %16 = arith.subf %14, %15 : vector<4x32xf32>
    %17 = arith.select %13, %4, %16 : vector<4x32xi1>, vector<4x32xf32>
    %cst_19 = arith.constant 1.000000e+00 : f32
    %18 = vector.broadcast %cst_19 : f32 to vector<4x32xf32>
    %19 = arith.addf %17, %18 : vector<4x32xf32>
    %cst_20 = arith.constant 0.000000e+00 : f32
    %20 = vector.broadcast %cst_20 : f32 to vector<4x32xf32>
    %21 = arith.cmpf ogt, %6, %20 : vector<4x32xf32>
    %22 = math.exp %6 : vector<4x32xf32>
    %cst_21 = arith.constant 1.000000e+00 : f32
    %23 = vector.broadcast %cst_21 : f32 to vector<4x32xf32>
    %24 = arith.subf %22, %23 : vector<4x32xf32>
    %25 = arith.select %21, %6, %24 : vector<4x32xi1>, vector<4x32xf32>
    %cst_22 = arith.constant 1.000000e+00 : f32
    %26 = vector.broadcast %cst_22 : f32 to vector<4x32xf32>
    %27 = arith.addf %25, %26 : vector<4x32xf32>
    %28 = vector.extract_strided_slice %4 {offsets = [0, 0], sizes = [4, 8], strides = [1, 1]} : vector<4x32xf32> to vector<4x8xf32>
    %29 = vector.extract_strided_slice %6 {offsets = [0, 0], sizes = [4, 8], strides = [1, 1]} : vector<4x32xf32> to vector<4x8xf32>
    %30 = vector.extract_strided_slice %8 {offsets = [0, 0], sizes = [4, 8], strides = [1, 1]} : vector<4x32xf32> to vector<4x8xf32>
    %31 = vector.extract_strided_slice %19 {offsets = [0, 0], sizes = [4, 8], strides = [1, 1]} : vector<4x32xf32> to vector<4x8xf32>
    %32 = vector.extract_strided_slice %27 {offsets = [0, 0], sizes = [4, 8], strides = [1, 1]} : vector<4x32xf32> to vector<4x8xf32>
    %c0_23 = arith.constant 0 : index
    %c0_24 = arith.constant 0 : index
    %c0_25 = arith.constant 0 : index
    %33 = vector.load %arg8[%c0_23, %c0_24, %c0_25] : memref<4x8x8xf32, #tpu.memory_space<vmem>>, vector<1x8x8xf32>
    %34 = vector.shape_cast %33 : vector<1x8x8xf32> to vector<8x8xf32>
    %c0_26 = arith.constant 0 : index
    %c0_27 = arith.constant 0 : index
    %c0_28 = arith.constant 0 : index
    %35 = vector.load %arg9[%c0_26, %c0_27, %c0_28] : memref<4x1x8xf32, #tpu.memory_space<vmem>>, vector<1x1x8xf32>
    %36 = vector.shape_cast %35 : vector<1x1x8xf32> to vector<1x8xf32>
    %cst_29 = arith.constant dense<0.000000e+00> : vector<4x4xf32>
    %37 = tpu.matmul %28, %29, %cst_29 {dimension_numbers = #tpu.dot_dimension_numbers<[1], [1], [0], [0], [0, 0, 1, 0], [], []>} : vector<4x8xf32>, vector<4x8xf32>, vector<4x4xf32> -> vector<4x4xf32>
    %cst_30 = arith.constant 0.353553385 : f32
    %38 = vector.broadcast %cst_30 : f32 to vector<4x4xf32>
    %39 = arith.mulf %37, %38 : vector<4x4xf32>
    %40 = arith.addf %39, %10 : vector<4x4xf32>
    %cst_31 = arith.constant dense<0xFF800000> : vector<4xf32>
    %41 = vector.multi_reduction <maximumf>, %40, %cst_31 [1] : vector<4x4xf32> to vector<4xf32>
    %42 = vector.shape_cast %41 : vector<4xf32> to vector<4x1xf32>
    %43 = vector.broadcast %42 : vector<4x1xf32> to vector<4x4xf32>
    %44 = arith.subf %40, %43 : vector<4x4xf32>
    %45 = math.exp %44 : vector<4x4xf32>
    %cst_32 = arith.constant dense<0.000000e+00> : vector<4xf32>
    %46 = vector.multi_reduction <add>, %45, %cst_32 [1] : vector<4x4xf32> to vector<4xf32>
    %47 = vector.shape_cast %46 : vector<4xf32> to vector<4x1xf32>
    %cst_33 = arith.constant dense<0.000000e+00> : vector<4x8xf32>
    %48 = tpu.matmul %45, %30, %cst_33 {dimension_numbers = #tpu.dot_dimension_numbers<[1], [0], [0], [1], [0, 0, 1, 1], [], []>} : vector<4x4xf32>, vector<4x8xf32>, vector<4x8xf32> -> vector<4x8xf32>
    %49 = tpu.reciprocal %47 {approx = true} : vector<4x1xf32> -> vector<4x1xf32>
    %50 = vector.broadcast %49 : vector<4x1xf32> to vector<4x8xf32>
    %51 = arith.mulf %48, %50 : vector<4x8xf32>
    %cst_34 = arith.constant dense<0.000000e+00> : vector<4x8xf32>
    %52 = tpu.matmul %31, %34, %cst_34 {dimension_numbers = #tpu.dot_dimension_numbers<[1], [0], [0], [1], [0, 0, 1, 1], [], []>} : vector<4x8xf32>, vector<8x8xf32>, vector<4x8xf32> -> vector<4x8xf32>
    %53 = vector.broadcast %36 : vector<1x8xf32> to vector<4x8xf32>
    %54 = arith.mulf %31, %53 : vector<4x8xf32>
    %cst_35 = arith.constant dense<0.000000e+00> : vector<4xf32>
    %55 = vector.multi_reduction <add>, %54, %cst_35 [1] : vector<4x8xf32> to vector<4xf32>
    %56 = vector.shape_cast %55 : vector<4xf32> to vector<4x1xf32>
    %cst_36 = arith.constant 9.99999997E-7 : f32
    %57 = vector.broadcast %cst_36 : f32 to vector<4x1xf32>
    %58 = arith.addf %56, %57 : vector<4x1xf32>
    %59 = tpu.reciprocal %58 {approx = true} : vector<4x1xf32> -> vector<4x1xf32>
    %60 = vector.broadcast %59 : vector<4x1xf32> to vector<4x8xf32>
    %61 = arith.mulf %52, %60 : vector<4x8xf32>
    %cst_37 = arith.constant dense<0.000000e+00> : vector<8x8xf32>
    %62 = tpu.matmul %32, %30, %cst_37 {dimension_numbers = #tpu.dot_dimension_numbers<[0], [0], [1], [1], [0, 1, 1, 1], [], []>} : vector<4x8xf32>, vector<4x8xf32>, vector<8x8xf32> -> vector<8x8xf32>
    %63 = arith.addf %34, %62 : vector<8x8xf32>
    %c0_38 = arith.constant 0 : index
    %c0_39 = arith.constant 0 : index
    %c0_40 = arith.constant 0 : index
    %64 = vector.load %arg8[%c0_38, %c0_39, %c0_40] : memref<4x8x8xf32, #tpu.memory_space<vmem>>, vector<1x8x8xf32>
    %65 = vector.shape_cast %64 : vector<1x8x8xf32> to vector<8x8xf32>
    %66 = vector.shape_cast %63 : vector<8x8xf32> to vector<1x8x8xf32>
    tpu.vector_store %arg8[%c0_38, %c0_39, %c0_40], %66 {strides = array<i32>} : memref<4x8x8xf32, #tpu.memory_space<vmem>>, vector<1x8x8xf32>,
    %cst_41 = arith.constant dense<0.000000e+00> : vector<8xf32>
    %67 = vector.multi_reduction <add>, %32, %cst_41 [0] : vector<4x8xf32> to vector<8xf32>
    %68 = vector.shape_cast %67 : vector<8xf32> to vector<1x8xf32>
    %69 = arith.addf %36, %68 : vector<1x8xf32>
    %c0_42 = arith.constant 0 : index
    %c0_43 = arith.constant 0 : index
    %c0_44 = arith.constant 0 : index
    %70 = vector.load %arg9[%c0_42, %c0_43, %c0_44] : memref<4x1x8xf32, #tpu.memory_space<vmem>>, vector<1x1x8xf32>
    %71 = vector.shape_cast %70 : vector<1x1x8xf32> to vector<1x8xf32>
    %72 = vector.shape_cast %69 : vector<1x8xf32> to vector<1x1x8xf32>
    tpu.vector_store %arg9[%c0_42, %c0_43, %c0_44], %72 {strides = array<i32>} : memref<4x1x8xf32, #tpu.memory_space<vmem>>, vector<1x1x8xf32>,
    %73 = vector.extract_strided_slice %4 {offsets = [0, 8], sizes = [4, 8], strides = [1, 1]} : vector<4x32xf32> to vector<4x8xf32>
    %74 = vector.extract_strided_slice %6 {offsets = [0, 8], sizes = [4, 8], strides = [1, 1]} : vector<4x32xf32> to vector<4x8xf32>
    %75 = vector.extract_strided_slice %8 {offsets = [0, 8], sizes = [4, 8], strides = [1, 1]} : vector<4x32xf32> to vector<4x8xf32>
    %76 = vector.extract_strided_slice %19 {offsets = [0, 8], sizes = [4, 8], strides = [1, 1]} : vector<4x32xf32> to vector<4x8xf32>
    %77 = vector.extract_strided_slice %27 {offsets = [0, 8], sizes = [4, 8], strides = [1, 1]} : vector<4x32xf32> to vector<4x8xf32>
    %c1 = arith.constant 1 : index
    %c0_45 = arith.constant 0 : index
    %c0_46 = arith.constant 0 : index
    %78 = vector.load %arg8[%c1, %c0_45, %c0_46] : memref<4x8x8xf32, #tpu.memory_space<vmem>>, vector<1x8x8xf32>
    %79 = vector.shape_cast %78 : vector<1x8x8xf32> to vector<8x8xf32>
    %c1_47 = arith.constant 1 : index
    %c0_48 = arith.constant 0 : index
    %c0_49 = arith.constant 0 : index
    %80 = vector.load %arg9[%c1_47, %c0_48, %c0_49] : memref<4x1x8xf32, #tpu.memory_space<vmem>>, vector<1x1x8xf32>
    %81 = vector.shape_cast %80 : vector<1x1x8xf32> to vector<1x8xf32>
    %cst_50 = arith.constant dense<0.000000e+00> : vector<4x4xf32>
    %82 = tpu.matmul %73, %74, %cst_50 {dimension_numbers = #tpu.dot_dimension_numbers<[1], [1], [0], [0], [0, 0, 1, 0], [], []>} : vector<4x8xf32>, vector<4x8xf32>, vector<4x4xf32> -> vector<4x4xf32>
    %cst_51 = arith.constant 0.353553385 : f32
    %83 = vector.broadcast %cst_51 : f32 to vector<4x4xf32>
    %84 = arith.mulf %82, %83 : vector<4x4xf32>
    %85 = arith.addf %84, %10 : vector<4x4xf32>
    %cst_52 = arith.constant dense<0xFF800000> : vector<4xf32>
    %86 = vector.multi_reduction <maximumf>, %85, %cst_52 [1] : vector<4x4xf32> to vector<4xf32>
    %87 = vector.shape_cast %86 : vector<4xf32> to vector<4x1xf32>
    %88 = vector.broadcast %87 : vector<4x1xf32> to vector<4x4xf32>
    %89 = arith.subf %85, %88 : vector<4x4xf32>
    %90 = math.exp %89 : vector<4x4xf32>
    %cst_53 = arith.constant dense<0.000000e+00> : vector<4xf32>
    %91 = vector.multi_reduction <add>, %90, %cst_53 [1] : vector<4x4xf32> to vector<4xf32>
    %92 = vector.shape_cast %91 : vector<4xf32> to vector<4x1xf32>
    %cst_54 = arith.constant dense<0.000000e+00> : vector<4x8xf32>
    %93 = tpu.matmul %90, %75, %cst_54 {dimension_numbers = #tpu.dot_dimension_numbers<[1], [0], [0], [1], [0, 0, 1, 1], [], []>} : vector<4x4xf32>, vector<4x8xf32>, vector<4x8xf32> -> vector<4x8xf32>
    %94 = tpu.reciprocal %92 {approx = true} : vector<4x1xf32> -> vector<4x1xf32>
    %95 = vector.broadcast %94 : vector<4x1xf32> to vector<4x8xf32>
    %96 = arith.mulf %93, %95 : vector<4x8xf32>
    %cst_55 = arith.constant dense<0.000000e+00> : vector<4x8xf32>
    %97 = tpu.matmul %76, %79, %cst_55 {dimension_numbers = #tpu.dot_dimension_numbers<[1], [0], [0], [1], [0, 0, 1, 1], [], []>} : vector<4x8xf32>, vector<8x8xf32>, vector<4x8xf32> -> vector<4x8xf32>
    %98 = vector.broadcast %81 : vector<1x8xf32> to vector<4x8xf32>
    %99 = arith.mulf %76, %98 : vector<4x8xf32>
    %cst_56 = arith.constant dense<0.000000e+00> : vector<4xf32>
    %100 = vector.multi_reduction <add>, %99, %cst_56 [1] : vector<4x8xf32> to vector<4xf32>
    %101 = vector.shape_cast %100 : vector<4xf32> to vector<4x1xf32>
    %cst_57 = arith.constant 9.99999997E-7 : f32
    %102 = vector.broadcast %cst_57 : f32 to vector<4x1xf32>
    %103 = arith.addf %101, %102 : vector<4x1xf32>
    %104 = tpu.reciprocal %103 {approx = true} : vector<4x1xf32> -> vector<4x1xf32>
    %105 = vector.broadcast %104 : vector<4x1xf32> to vector<4x8xf32>
    %106 = arith.mulf %97, %105 : vector<4x8xf32>
    %cst_58 = arith.constant dense<0.000000e+00> : vector<8x8xf32>
    %107 = tpu.matmul %77, %75, %cst_58 {dimension_numbers = #tpu.dot_dimension_numbers<[0], [0], [1], [1], [0, 1, 1, 1], [], []>} : vector<4x8xf32>, vector<4x8xf32>, vector<8x8xf32> -> vector<8x8xf32>
    %108 = arith.addf %79, %107 : vector<8x8xf32>
    %c1_59 = arith.constant 1 : index
    %c0_60 = arith.constant 0 : index
    %c0_61 = arith.constant 0 : index
    %109 = vector.load %arg8[%c1_59, %c0_60, %c0_61] : memref<4x8x8xf32, #tpu.memory_space<vmem>>, vector<1x8x8xf32>
    %110 = vector.shape_cast %109 : vector<1x8x8xf32> to vector<8x8xf32>
    %111 = vector.shape_cast %108 : vector<8x8xf32> to vector<1x8x8xf32>
    tpu.vector_store %arg8[%c1_59, %c0_60, %c0_61], %111 {strides = array<i32>} : memref<4x8x8xf32, #tpu.memory_space<vmem>>, vector<1x8x8xf32>,
    %cst_62 = arith.constant dense<0.000000e+00> : vector<8xf32>
    %112 = vector.multi_reduction <add>, %77, %cst_62 [0] : vector<4x8xf32> to vector<8xf32>
    %113 = vector.shape_cast %112 : vector<8xf32> to vector<1x8xf32>
    %114 = arith.addf %81, %113 : vector<1x8xf32>
    %c1_63 = arith.constant 1 : index
    %c0_64 = arith.constant 0 : index
    %c0_65 = arith.constant 0 : index
    %115 = vector.load %arg9[%c1_63, %c0_64, %c0_65] : memref<4x1x8xf32, #tpu.memory_space<vmem>>, vector<1x1x8xf32>
    %116 = vector.shape_cast %115 : vector<1x1x8xf32> to vector<1x8xf32>
    %117 = vector.shape_cast %114 : vector<1x8xf32> to vector<1x1x8xf32>
    tpu.vector_store %arg9[%c1_63, %c0_64, %c0_65], %117 {strides = array<i32>} : memref<4x1x8xf32, #tpu.memory_space<vmem>>, vector<1x1x8xf32>,
    %118 = vector.extract_strided_slice %4 {offsets = [0, 16], sizes = [4, 8], strides = [1, 1]} : vector<4x32xf32> to vector<4x8xf32>
    %119 = vector.extract_strided_slice %6 {offsets = [0, 16], sizes = [4, 8], strides = [1, 1]} : vector<4x32xf32> to vector<4x8xf32>
    %120 = vector.extract_strided_slice %8 {offsets = [0, 16], sizes = [4, 8], strides = [1, 1]} : vector<4x32xf32> to vector<4x8xf32>
    %121 = vector.extract_strided_slice %19 {offsets = [0, 16], sizes = [4, 8], strides = [1, 1]} : vector<4x32xf32> to vector<4x8xf32>
    %122 = vector.extract_strided_slice %27 {offsets = [0, 16], sizes = [4, 8], strides = [1, 1]} : vector<4x32xf32> to vector<4x8xf32>
    %c2 = arith.constant 2 : index
    %c0_66 = arith.constant 0 : index
    %c0_67 = arith.constant 0 : index
    %123 = vector.load %arg8[%c2, %c0_66, %c0_67] : memref<4x8x8xf32, #tpu.memory_space<vmem>>, vector<1x8x8xf32>
    %124 = vector.shape_cast %123 : vector<1x8x8xf32> to vector<8x8xf32>
    %c2_68 = arith.constant 2 : index
    %c0_69 = arith.constant 0 : index
    %c0_70 = arith.constant 0 : index
    %125 = vector.load %arg9[%c2_68, %c0_69, %c0_70] : memref<4x1x8xf32, #tpu.memory_space<vmem>>, vector<1x1x8xf32>
    %126 = vector.shape_cast %125 : vector<1x1x8xf32> to vector<1x8xf32>
    %cst_71 = arith.constant dense<0.000000e+00> : vector<4x4xf32>
    %127 = tpu.matmul %118, %119, %cst_71 {dimension_numbers = #tpu.dot_dimension_numbers<[1], [1], [0], [0], [0, 0, 1, 0], [], []>} : vector<4x8xf32>, vector<4x8xf32>, vector<4x4xf32> -> vector<4x4xf32>
    %cst_72 = arith.constant 0.353553385 : f32
    %128 = vector.broadcast %cst_72 : f32 to vector<4x4xf32>
    %129 = arith.mulf %127, %128 : vector<4x4xf32>
    %130 = arith.addf %129, %10 : vector<4x4xf32>
    %cst_73 = arith.constant dense<0xFF800000> : vector<4xf32>
    %131 = vector.multi_reduction <maximumf>, %130, %cst_73 [1] : vector<4x4xf32> to vector<4xf32>
    %132 = vector.shape_cast %131 : vector<4xf32> to vector<4x1xf32>
    %133 = vector.broadcast %132 : vector<4x1xf32> to vector<4x4xf32>
    %134 = arith.subf %130, %133 : vector<4x4xf32>
    %135 = math.exp %134 : vector<4x4xf32>
    %cst_74 = arith.constant dense<0.000000e+00> : vector<4xf32>
    %136 = vector.multi_reduction <add>, %135, %cst_74 [1] : vector<4x4xf32> to vector<4xf32>
    %137 = vector.shape_cast %136 : vector<4xf32> to vector<4x1xf32>
    %cst_75 = arith.constant dense<0.000000e+00> : vector<4x8xf32>
    %138 = tpu.matmul %135, %120, %cst_75 {dimension_numbers = #tpu.dot_dimension_numbers<[1], [0], [0], [1], [0, 0, 1, 1], [], []>} : vector<4x4xf32>, vector<4x8xf32>, vector<4x8xf32> -> vector<4x8xf32>
    %139 = tpu.reciprocal %137 {approx = true} : vector<4x1xf32> -> vector<4x1xf32>
    %140 = vector.broadcast %139 : vector<4x1xf32> to vector<4x8xf32>
    %141 = arith.mulf %138, %140 : vector<4x8xf32>
    %cst_76 = arith.constant dense<0.000000e+00> : vector<4x8xf32>
    %142 = tpu.matmul %121, %124, %cst_76 {dimension_numbers = #tpu.dot_dimension_numbers<[1], [0], [0], [1], [0, 0, 1, 1], [], []>} : vector<4x8xf32>, vector<8x8xf32>, vector<4x8xf32> -> vector<4x8xf32>
    %143 = vector.broadcast %126 : vector<1x8xf32> to vector<4x8xf32>
    %144 = arith.mulf %121, %143 : vector<4x8xf32>
    %cst_77 = arith.constant dense<0.000000e+00> : vector<4xf32>
    %145 = vector.multi_reduction <add>, %144, %cst_77 [1] : vector<4x8xf32> to vector<4xf32>
    %146 = vector.shape_cast %145 : vector<4xf32> to vector<4x1xf32>
    %cst_78 = arith.constant 9.99999997E-7 : f32
    %147 = vector.broadcast %cst_78 : f32 to vector<4x1xf32>
    %148 = arith.addf %146, %147 : vector<4x1xf32>
    %149 = tpu.reciprocal %148 {approx = true} : vector<4x1xf32> -> vector<4x1xf32>
    %150 = vector.broadcast %149 : vector<4x1xf32> to vector<4x8xf32>
    %151 = arith.mulf %142, %150 : vector<4x8xf32>
    %cst_79 = arith.constant dense<0.000000e+00> : vector<8x8xf32>
    %152 = tpu.matmul %122, %120, %cst_79 {dimension_numbers = #tpu.dot_dimension_numbers<[0], [0], [1], [1], [0, 1, 1, 1], [], []>} : vector<4x8xf32>, vector<4x8xf32>, vector<8x8xf32> -> vector<8x8xf32>
    %153 = arith.addf %124, %152 : vector<8x8xf32>
    %c2_80 = arith.constant 2 : index
    %c0_81 = arith.constant 0 : index
    %c0_82 = arith.constant 0 : index
    %154 = vector.load %arg8[%c2_80, %c0_81, %c0_82] : memref<4x8x8xf32, #tpu.memory_space<vmem>>, vector<1x8x8xf32>
    %155 = vector.shape_cast %154 : vector<1x8x8xf32> to vector<8x8xf32>
    %156 = vector.shape_cast %153 : vector<8x8xf32> to vector<1x8x8xf32>
    tpu.vector_store %arg8[%c2_80, %c0_81, %c0_82], %156 {strides = array<i32>} : memref<4x8x8xf32, #tpu.memory_space<vmem>>, vector<1x8x8xf32>,
    %cst_83 = arith.constant dense<0.000000e+00> : vector<8xf32>
    %157 = vector.multi_reduction <add>, %122, %cst_83 [0] : vector<4x8xf32> to vector<8xf32>
    %158 = vector.shape_cast %157 : vector<8xf32> to vector<1x8xf32>
    %159 = arith.addf %126, %158 : vector<1x8xf32>
    %c2_84 = arith.constant 2 : index
    %c0_85 = arith.constant 0 : index
    %c0_86 = arith.constant 0 : index
    %160 = vector.load %arg9[%c2_84, %c0_85, %c0_86] : memref<4x1x8xf32, #tpu.memory_space<vmem>>, vector<1x1x8xf32>
    %161 = vector.shape_cast %160 : vector<1x1x8xf32> to vector<1x8xf32>
    %162 = vector.shape_cast %159 : vector<1x8xf32> to vector<1x1x8xf32>
    tpu.vector_store %arg9[%c2_84, %c0_85, %c0_86], %162 {strides = array<i32>} : memref<4x1x8xf32, #tpu.memory_space<vmem>>, vector<1x1x8xf32>,
    %163 = vector.extract_strided_slice %4 {offsets = [0, 24], sizes = [4, 8], strides = [1, 1]} : vector<4x32xf32> to vector<4x8xf32>
    %164 = vector.extract_strided_slice %6 {offsets = [0, 24], sizes = [4, 8], strides = [1, 1]} : vector<4x32xf32> to vector<4x8xf32>
    %165 = vector.extract_strided_slice %8 {offsets = [0, 24], sizes = [4, 8], strides = [1, 1]} : vector<4x32xf32> to vector<4x8xf32>
    %166 = vector.extract_strided_slice %19 {offsets = [0, 24], sizes = [4, 8], strides = [1, 1]} : vector<4x32xf32> to vector<4x8xf32>
    %167 = vector.extract_strided_slice %27 {offsets = [0, 24], sizes = [4, 8], strides = [1, 1]} : vector<4x32xf32> to vector<4x8xf32>
    %c3 = arith.constant 3 : index
    %c0_87 = arith.constant 0 : index
    %c0_88 = arith.constant 0 : index
    %168 = vector.load %arg8[%c3, %c0_87, %c0_88] : memref<4x8x8xf32, #tpu.memory_space<vmem>>, vector<1x8x8xf32>
    %169 = vector.shape_cast %168 : vector<1x8x8xf32> to vector<8x8xf32>
    %c3_89 = arith.constant 3 : index
    %c0_90 = arith.constant 0 : index
    %c0_91 = arith.constant 0 : index
    %170 = vector.load %arg9[%c3_89, %c0_90, %c0_91] : memref<4x1x8xf32, #tpu.memory_space<vmem>>, vector<1x1x8xf32>
    %171 = vector.shape_cast %170 : vector<1x1x8xf32> to vector<1x8xf32>
    %cst_92 = arith.constant dense<0.000000e+00> : vector<4x4xf32>
    %172 = tpu.matmul %163, %164, %cst_92 {dimension_numbers = #tpu.dot_dimension_numbers<[1], [1], [0], [0], [0, 0, 1, 0], [], []>} : vector<4x8xf32>, vector<4x8xf32>, vector<4x4xf32> -> vector<4x4xf32>
    %cst_93 = arith.constant 0.353553385 : f32
    %173 = vector.broadcast %cst_93 : f32 to vector<4x4xf32>
    %174 = arith.mulf %172, %173 : vector<4x4xf32>
    %175 = arith.addf %174, %10 : vector<4x4xf32>
    %cst_94 = arith.constant dense<0xFF800000> : vector<4xf32>
    %176 = vector.multi_reduction <maximumf>, %175, %cst_94 [1] : vector<4x4xf32> to vector<4xf32>
    %177 = vector.shape_cast %176 : vector<4xf32> to vector<4x1xf32>
    %178 = vector.broadcast %177 : vector<4x1xf32> to vector<4x4xf32>
    %179 = arith.subf %175, %178 : vector<4x4xf32>
    %180 = math.exp %179 : vector<4x4xf32>
    %cst_95 = arith.constant dense<0.000000e+00> : vector<4xf32>
    %181 = vector.multi_reduction <add>, %180, %cst_95 [1] : vector<4x4xf32> to vector<4xf32>
    %182 = vector.shape_cast %181 : vector<4xf32> to vector<4x1xf32>
    %cst_96 = arith.constant dense<0.000000e+00> : vector<4x8xf32>
    %183 = tpu.matmul %180, %165, %cst_96 {dimension_numbers = #tpu.dot_dimension_numbers<[1], [0], [0], [1], [0, 0, 1, 1], [], []>} : vector<4x4xf32>, vector<4x8xf32>, vector<4x8xf32> -> vector<4x8xf32>
    %184 = tpu.reciprocal %182 {approx = true} : vector<4x1xf32> -> vector<4x1xf32>
    %185 = vector.broadcast %184 : vector<4x1xf32> to vector<4x8xf32>
    %186 = arith.mulf %183, %185 : vector<4x8xf32>
    %cst_97 = arith.constant dense<0.000000e+00> : vector<4x8xf32>
    %187 = tpu.matmul %166, %169, %cst_97 {dimension_numbers = #tpu.dot_dimension_numbers<[1], [0], [0], [1], [0, 0, 1, 1], [], []>} : vector<4x8xf32>, vector<8x8xf32>, vector<4x8xf32> -> vector<4x8xf32>
    %188 = vector.broadcast %171 : vector<1x8xf32> to vector<4x8xf32>
    %189 = arith.mulf %166, %188 : vector<4x8xf32>
    %cst_98 = arith.constant dense<0.000000e+00> : vector<4xf32>
    %190 = vector.multi_reduction <add>, %189, %cst_98 [1] : vector<4x8xf32> to vector<4xf32>
    %191 = vector.shape_cast %190 : vector<4xf32> to vector<4x1xf32>
    %cst_99 = arith.constant 9.99999997E-7 : f32
    %192 = vector.broadcast %cst_99 : f32 to vector<4x1xf32>
    %193 = arith.addf %191, %192 : vector<4x1xf32>
    %194 = tpu.reciprocal %193 {approx = true} : vector<4x1xf32> -> vector<4x1xf32>
    %195 = vector.broadcast %194 : vector<4x1xf32> to vector<4x8xf32>
    %196 = arith.mulf %187, %195 : vector<4x8xf32>
    %cst_100 = arith.constant dense<0.000000e+00> : vector<8x8xf32>
    %197 = tpu.matmul %167, %165, %cst_100 {dimension_numbers = #tpu.dot_dimension_numbers<[0], [0], [1], [1], [0, 1, 1, 1], [], []>} : vector<4x8xf32>, vector<4x8xf32>, vector<8x8xf32> -> vector<8x8xf32>
    %198 = arith.addf %169, %197 : vector<8x8xf32>
    %c3_101 = arith.constant 3 : index
    %c0_102 = arith.constant 0 : index
    %c0_103 = arith.constant 0 : index
    %199 = vector.load %arg8[%c3_101, %c0_102, %c0_103] : memref<4x8x8xf32, #tpu.memory_space<vmem>>, vector<1x8x8xf32>
    %200 = vector.shape_cast %199 : vector<1x8x8xf32> to vector<8x8xf32>
    %201 = vector.shape_cast %198 : vector<8x8xf32> to vector<1x8x8xf32>
    tpu.vector_store %arg8[%c3_101, %c0_102, %c0_103], %201 {strides = array<i32>} : memref<4x8x8xf32, #tpu.memory_space<vmem>>, vector<1x8x8xf32>,
    %cst_104 = arith.constant dense<0.000000e+00> : vector<8xf32>
    %202 = vector.multi_reduction <add>, %167, %cst_104 [0] : vector<4x8xf32> to vector<8xf32>
    %203 = vector.shape_cast %202 : vector<8xf32> to vector<1x8xf32>
    %204 = arith.addf %171, %203 : vector<1x8xf32>
    %c3_105 = arith.constant 3 : index
    %c0_106 = arith.constant 0 : index
    %c0_107 = arith.constant 0 : index
    %205 = vector.load %arg9[%c3_105, %c0_106, %c0_107] : memref<4x1x8xf32, #tpu.memory_space<vmem>>, vector<1x1x8xf32>
    %206 = vector.shape_cast %205 : vector<1x1x8xf32> to vector<1x8xf32>
    %207 = vector.shape_cast %204 : vector<1x8xf32> to vector<1x1x8xf32>
    tpu.vector_store %arg9[%c3_105, %c0_106, %c0_107], %207 {strides = array<i32>} : memref<4x1x8xf32, #tpu.memory_space<vmem>>, vector<1x1x8xf32>,
    %208 = tpu.concatenate %51, %96, %141, %186 in 1 : vector<4x8xf32>, vector<4x8xf32>, vector<4x8xf32>, vector<4x8xf32> -> vector<4x32xf32>
    %209 = tpu.concatenate %61, %106, %151, %196 in 1 : vector<4x8xf32>, vector<4x8xf32>, vector<4x8xf32>, vector<4x8xf32> -> vector<4x32xf32>
    %210 = vector.broadcast %11 : vector<1x32xf32> to vector<4x32xf32>
    %211 = arith.mulf %210, %209 : vector<4x32xf32>
    %cst_108 = arith.constant 1.000000e+00 : f32
    %212 = vector.broadcast %cst_108 : f32 to vector<1x32xf32>
    %213 = arith.subf %212, %11 : vector<1x32xf32>
    %214 = vector.broadcast %213 : vector<1x32xf32> to vector<4x32xf32>
    %215 = arith.mulf %214, %208 : vector<4x32xf32>
    %216 = arith.addf %211, %215 : vector<4x32xf32>
    %c0_109 = arith.constant 0 : index
    %c0_110 = arith.constant 0 : index
    %c0_111 = arith.constant 0 : index
    %c0_112 = arith.constant 0 : index
    %217 = vector.load %arg7[%c0_109, %c0_110, %c0_111, %c0_112] : memref<1x1x4x32xf32, #tpu.memory_space<vmem>>, vector<1x1x4x32xf32>
    %218 = vector.shape_cast %217 : vector<1x1x4x32xf32> to vector<4x32xf32>
    %219 = vector.shape_cast %216 : vector<4x32xf32> to vector<1x1x4x32xf32>
    tpu.vector_store %arg7[%c0_109, %c0_110, %c0_111, %c0_112], %219 {strides = array<i32>} : memref<1x1x4x32xf32, #tpu.memory_space<vmem>>, vector<1x1x4x32xf32>,
    return
  }
  func.func @transform_0(%arg0: i32, %arg1: i32) -> (i32, i32, i32, i32) {
    %c0_i32 = arith.constant 0 : i32
    %c0_i32_0 = arith.constant 0 : i32
    %c0_i32_1 = arith.constant 0 : i32
    return %arg0, %arg1, %c0_i32, %c0_i32_0 : i32, i32, i32, i32
  }
  func.func @transform_1(%arg0: i32, %arg1: i32) -> (i32, i32, i32, i32) {
    %c0_i32 = arith.constant 0 : i32
    %c0_i32_0 = arith.constant 0 : i32
    %c0_i32_1 = arith.constant 0 : i32
    return %arg0, %arg1, %c0_i32, %c0_i32_0 : i32, i32, i32, i32
  }
  func.func @transform_2(%arg0: i32, %arg1: i32) -> (i32, i32, i32, i32) {
    %c0_i32 = arith.constant 0 : i32
    %c0_i32_0 = arith.constant 0 : i32
    %c0_i32_1 = arith.constant 0 : i32
    return %arg0, %arg1, %c0_i32, %c0_i32_0 : i32, i32, i32, i32
  }
  func.func @transform_3(%arg0: i32, %arg1: i32) -> (i32, i32, i32, i32) {
    %c0_i32 = arith.constant 0 : i32
    %c0_i32_0 = arith.constant 0 : i32
    %c0_i32_1 = arith.constant 0 : i32
    return %arg0, %arg1, %c0_i32, %c0_i32_0 : i32, i32, i32, i32
  }
  func.func @transform_4(%arg0: i32, %arg1: i32) -> (i32, i32) {
    %c0_i32 = arith.constant 0 : i32
    %c0_i32_0 = arith.constant 0 : i32
    %c0_i32_1 = arith.constant 0 : i32
    return %c0_i32, %c0_i32_0 : i32, i32
  }
  func.func @transform_5(%arg0: i32, %arg1: i32) -> (i32, i32, i32, i32) {
    %c0_i32 = arith.constant 0 : i32
    %c0_i32_0 = arith.constant 0 : i32
    %c0_i32_1 = arith.constant 0 : i32
    return %arg0, %arg1, %c0_i32, %c0_i32_0 : i32, i32, i32, i32
  }
}

module attributes {stable_mosaic.version = 11 : i64} {
  func.func @_linear_kernel_single_k(%arg0: i32, %arg1: i32, %arg2: memref<16x64xf32, #tpu.memory_space<vmem>>, %arg3: memref<64x32xf32, #tpu.memory_space<vmem>>, %arg4: memref<1x32xf32, #tpu.memory_space<vmem>>, %arg5: memref<16x32xf32, #tpu.memory_space<vmem>>) attributes {dimension_semantics = [#tpu.dimension_semantics<parallel>, #tpu.dimension_semantics<parallel>], iteration_bounds = array<i64: 1, 1>, scalar_prefetch = 0 : i64, scratch_operands = 0 : i64, tpu.core_type = #tpu.core_type<tc>, window_params = [{transform_indices = @transform_0, window_bounds = array<i64: 16, 64>}, {transform_indices = @transform_1, window_bounds = array<i64: 64, 32>}, {transform_indices = @transform_2, window_bounds = array<i64: 1, 32>}, {transform_indices = @transform_3, window_bounds = array<i64: 16, 32>}]} {
    %c0 = arith.constant 0 : index
    %c0_0 = arith.constant 0 : index
    %0 = vector.load %arg2[%c0, %c0_0] : memref<16x64xf32, #tpu.memory_space<vmem>>, vector<16x64xf32>
    %1 = arith.truncf %0 : vector<16x64xf32> to vector<16x64xbf16>
    %c0_1 = arith.constant 0 : index
    %c0_2 = arith.constant 0 : index
    %2 = vector.load %arg3[%c0_1, %c0_2] : memref<64x32xf32, #tpu.memory_space<vmem>>, vector<64x32xf32>
    %3 = arith.truncf %2 : vector<64x32xf32> to vector<64x32xbf16>
    %cst = arith.constant dense<0.000000e+00> : vector<16x32xf32>
    %4 = tpu.matmul %1, %3, %cst {dimension_numbers = #tpu.dot_dimension_numbers<[1], [0], [0], [1], [0, 0, 1, 1], [], []>} : vector<16x64xbf16>, vector<64x32xbf16>, vector<16x32xf32> -> vector<16x32xf32>
    %c0_3 = arith.constant 0 : index
    %c0_4 = arith.constant 0 : index
    %5 = vector.load %arg4[%c0_3, %c0_4] : memref<1x32xf32, #tpu.memory_space<vmem>>, vector<1x32xf32>
    %6 = vector.broadcast %5 : vector<1x32xf32> to vector<16x32xf32>
    %7 = arith.addf %4, %6 : vector<16x32xf32>
    %c0_5 = arith.constant 0 : index
    %c0_6 = arith.constant 0 : index
    %8 = vector.load %arg5[%c0_5, %c0_6] : memref<16x32xf32, #tpu.memory_space<vmem>>, vector<16x32xf32>
    tpu.vector_store %arg5[%c0_5, %c0_6], %7 {strides = array<i32>} : memref<16x32xf32, #tpu.memory_space<vmem>>, vector<16x32xf32>,
    return
  }
  func.func @transform_0(%arg0: i32, %arg1: i32) -> (i32, i32) {
    %c0_i32 = arith.constant 0 : i32
    %c0_i32_0 = arith.constant 0 : i32
    return %arg0, %c0_i32 : i32, i32
  }
  func.func @transform_1(%arg0: i32, %arg1: i32) -> (i32, i32) {
    %c0_i32 = arith.constant 0 : i32
    %c0_i32_0 = arith.constant 0 : i32
    return %c0_i32, %arg1 : i32, i32
  }
  func.func @transform_2(%arg0: i32, %arg1: i32) -> (i32, i32) {
    %c0_i32 = arith.constant 0 : i32
    %c0_i32_0 = arith.constant 0 : i32
    return %c0_i32, %arg1 : i32, i32
  }
  func.func @transform_3(%arg0: i32, %arg1: i32) -> (i32, i32) {
    %c0_i32 = arith.constant 0 : i32
    return %arg0, %arg1 : i32, i32
  }
}

module attributes {stable_mosaic.version = 11 : i64} {
  func.func @_linear_kernel_single_k(%arg0: i32, %arg1: i32, %arg2: memref<16x32xf32, #tpu.memory_space<vmem>>, %arg3: memref<32x64xf32, #tpu.memory_space<vmem>>, %arg4: memref<1x64xf32, #tpu.memory_space<vmem>>, %arg5: memref<16x64xf32, #tpu.memory_space<vmem>>) attributes {dimension_semantics = [#tpu.dimension_semantics<parallel>, #tpu.dimension_semantics<parallel>], iteration_bounds = array<i64: 1, 1>, scalar_prefetch = 0 : i64, scratch_operands = 0 : i64, tpu.core_type = #tpu.core_type<tc>, window_params = [{transform_indices = @transform_0, window_bounds = array<i64: 16, 32>}, {transform_indices = @transform_1, window_bounds = array<i64: 32, 64>}, {transform_indices = @transform_2, window_bounds = array<i64: 1, 64>}, {transform_indices = @transform_3, window_bounds = array<i64: 16, 64>}]} {
    %c0 = arith.constant 0 : index
    %c0_0 = arith.constant 0 : index
    %0 = vector.load %arg2[%c0, %c0_0] : memref<16x32xf32, #tpu.memory_space<vmem>>, vector<16x32xf32>
    %1 = arith.truncf %0 : vector<16x32xf32> to vector<16x32xbf16>
    %c0_1 = arith.constant 0 : index
    %c0_2 = arith.constant 0 : index
    %2 = vector.load %arg3[%c0_1, %c0_2] : memref<32x64xf32, #tpu.memory_space<vmem>>, vector<32x64xf32>
    %3 = arith.truncf %2 : vector<32x64xf32> to vector<32x64xbf16>
    %cst = arith.constant dense<0.000000e+00> : vector<16x64xf32>
    %4 = tpu.matmul %1, %3, %cst {dimension_numbers = #tpu.dot_dimension_numbers<[1], [0], [0], [1], [0, 0, 1, 1], [], []>} : vector<16x32xbf16>, vector<32x64xbf16>, vector<16x64xf32> -> vector<16x64xf32>
    %c0_3 = arith.constant 0 : index
    %c0_4 = arith.constant 0 : index
    %5 = vector.load %arg4[%c0_3, %c0_4] : memref<1x64xf32, #tpu.memory_space<vmem>>, vector<1x64xf32>
    %6 = vector.broadcast %5 : vector<1x64xf32> to vector<16x64xf32>
    %7 = arith.addf %4, %6 : vector<16x64xf32>
    %c0_5 = arith.constant 0 : index
    %c0_6 = arith.constant 0 : index
    %8 = vector.load %arg5[%c0_5, %c0_6] : memref<16x64xf32, #tpu.memory_space<vmem>>, vector<16x64xf32>
    tpu.vector_store %arg5[%c0_5, %c0_6], %7 {strides = array<i32>} : memref<16x64xf32, #tpu.memory_space<vmem>>, vector<16x64xf32>,
    return
  }
  func.func @transform_0(%arg0: i32, %arg1: i32) -> (i32, i32) {
    %c0_i32 = arith.constant 0 : i32
    %c0_i32_0 = arith.constant 0 : i32
    return %arg0, %c0_i32 : i32, i32
  }
  func.func @transform_1(%arg0: i32, %arg1: i32) -> (i32, i32) {
    %c0_i32 = arith.constant 0 : i32
    %c0_i32_0 = arith.constant 0 : i32
    return %c0_i32, %arg1 : i32, i32
  }
  func.func @transform_2(%arg0: i32, %arg1: i32) -> (i32, i32) {
    %c0_i32 = arith.constant 0 : i32
    %c0_i32_0 = arith.constant 0 : i32
    return %c0_i32, %arg1 : i32, i32
  }
  func.func @transform_3(%arg0: i32, %arg1: i32) -> (i32, i32) {
    %c0_i32 = arith.constant 0 : i32
    return %arg0, %arg1 : i32, i32
  }
}

module attributes {stable_mosaic.version = 11 : i64} {
  func.func @_linear_kernel_single_k(%arg0: i32, %arg1: i32, %arg2: memref<16x32xf32, #tpu.memory_space<vmem>>, %arg3: memref<32x64xf32, #tpu.memory_space<vmem>>, %arg4: memref<1x64xf32, #tpu.memory_space<vmem>>, %arg5: memref<16x64xf32, #tpu.memory_space<vmem>>) attributes {dimension_semantics = [#tpu.dimension_semantics<parallel>, #tpu.dimension_semantics<parallel>], iteration_bounds = array<i64: 1, 1>, scalar_prefetch = 0 : i64, scratch_operands = 0 : i64, tpu.core_type = #tpu.core_type<tc>, window_params = [{transform_indices = @transform_0, window_bounds = array<i64: 16, 32>}, {transform_indices = @transform_1, window_bounds = array<i64: 32, 64>}, {transform_indices = @transform_2, window_bounds = array<i64: 1, 64>}, {transform_indices = @transform_3, window_bounds = array<i64: 16, 64>}]} {
    %c0 = arith.constant 0 : index
    %c0_0 = arith.constant 0 : index
    %0 = vector.load %arg2[%c0, %c0_0] : memref<16x32xf32, #tpu.memory_space<vmem>>, vector<16x32xf32>
    %1 = arith.truncf %0 : vector<16x32xf32> to vector<16x32xbf16>
    %c0_1 = arith.constant 0 : index
    %c0_2 = arith.constant 0 : index
    %2 = vector.load %arg3[%c0_1, %c0_2] : memref<32x64xf32, #tpu.memory_space<vmem>>, vector<32x64xf32>
    %3 = arith.truncf %2 : vector<32x64xf32> to vector<32x64xbf16>
    %cst = arith.constant dense<0.000000e+00> : vector<16x64xf32>
    %4 = tpu.matmul %1, %3, %cst {dimension_numbers = #tpu.dot_dimension_numbers<[1], [0], [0], [1], [0, 0, 1, 1], [], []>} : vector<16x32xbf16>, vector<32x64xbf16>, vector<16x64xf32> -> vector<16x64xf32>
    %c0_3 = arith.constant 0 : index
    %c0_4 = arith.constant 0 : index
    %5 = vector.load %arg4[%c0_3, %c0_4] : memref<1x64xf32, #tpu.memory_space<vmem>>, vector<1x64xf32>
    %6 = vector.broadcast %5 : vector<1x64xf32> to vector<16x64xf32>
    %7 = arith.addf %4, %6 : vector<16x64xf32>
    %cst_5 = arith.constant 0.000000e+00 : f32
    %8 = vector.broadcast %cst_5 : f32 to vector<16x64xf32>
    %9 = arith.maximumf %7, %8 : vector<16x64xf32>
    %c0_6 = arith.constant 0 : index
    %c0_7 = arith.constant 0 : index
    %10 = vector.load %arg5[%c0_6, %c0_7] : memref<16x64xf32, #tpu.memory_space<vmem>>, vector<16x64xf32>
    tpu.vector_store %arg5[%c0_6, %c0_7], %9 {strides = array<i32>} : memref<16x64xf32, #tpu.memory_space<vmem>>, vector<16x64xf32>,
    return
  }
  func.func @transform_0(%arg0: i32, %arg1: i32) -> (i32, i32) {
    %c0_i32 = arith.constant 0 : i32
    %c0_i32_0 = arith.constant 0 : i32
    return %arg0, %c0_i32 : i32, i32
  }
  func.func @transform_1(%arg0: i32, %arg1: i32) -> (i32, i32) {
    %c0_i32 = arith.constant 0 : i32
    %c0_i32_0 = arith.constant 0 : i32
    return %c0_i32, %arg1 : i32, i32
  }
  func.func @transform_2(%arg0: i32, %arg1: i32) -> (i32, i32) {
    %c0_i32 = arith.constant 0 : i32
    %c0_i32_0 = arith.constant 0 : i32
    return %c0_i32, %arg1 : i32, i32
  }
  func.func @transform_3(%arg0: i32, %arg1: i32) -> (i32, i32) {
    %c0_i32 = arith.constant 0 : i32
    return %arg0, %arg1 : i32, i32
  }
}

module attributes {stable_mosaic.version = 11 : i64} {
  func.func @_linear_kernel_single_k(%arg0: i32, %arg1: i32, %arg2: memref<16x32xf32, #tpu.memory_space<vmem>>, %arg3: memref<32x128xf32, #tpu.memory_space<vmem>>, %arg4: memref<1x128xf32, #tpu.memory_space<vmem>>, %arg5: memref<16x128xf32, #tpu.memory_space<vmem>>) attributes {dimension_semantics = [#tpu.dimension_semantics<parallel>, #tpu.dimension_semantics<parallel>], iteration_bounds = array<i64: 1, 1>, scalar_prefetch = 0 : i64, scratch_operands = 0 : i64, tpu.core_type = #tpu.core_type<tc>, window_params = [{transform_indices = @transform_0, window_bounds = array<i64: 16, 32>}, {transform_indices = @transform_1, window_bounds = array<i64: 32, 128>}, {transform_indices = @transform_2, window_bounds = array<i64: 1, 128>}, {transform_indices = @transform_3, window_bounds = array<i64: 16, 128>}]} {
    %c0 = arith.constant 0 : index
    %c0_0 = arith.constant 0 : index
    %0 = vector.load %arg2[%c0, %c0_0] : memref<16x32xf32, #tpu.memory_space<vmem>>, vector<16x32xf32>
    %1 = arith.truncf %0 : vector<16x32xf32> to vector<16x32xbf16>
    %c0_1 = arith.constant 0 : index
    %c0_2 = arith.constant 0 : index
    %2 = vector.load %arg3[%c0_1, %c0_2] : memref<32x128xf32, #tpu.memory_space<vmem>>, vector<32x128xf32>
    %3 = arith.truncf %2 : vector<32x128xf32> to vector<32x128xbf16>
    %cst = arith.constant dense<0.000000e+00> : vector<16x128xf32>
    %4 = tpu.matmul %1, %3, %cst {dimension_numbers = #tpu.dot_dimension_numbers<[1], [0], [0], [1], [0, 0, 1, 1], [], []>} : vector<16x32xbf16>, vector<32x128xbf16>, vector<16x128xf32> -> vector<16x128xf32>
    %c0_3 = arith.constant 0 : index
    %c0_4 = arith.constant 0 : index
    %5 = vector.load %arg4[%c0_3, %c0_4] : memref<1x128xf32, #tpu.memory_space<vmem>>, vector<1x128xf32>
    %6 = vector.broadcast %5 : vector<1x128xf32> to vector<16x128xf32>
    %7 = arith.addf %4, %6 : vector<16x128xf32>
    %c0_5 = arith.constant 0 : index
    %c0_6 = arith.constant 0 : index
    %8 = vector.load %arg5[%c0_5, %c0_6] : memref<16x128xf32, #tpu.memory_space<vmem>>, vector<16x128xf32>
    tpu.vector_store %arg5[%c0_5, %c0_6], %7 {strides = array<i32>} : memref<16x128xf32, #tpu.memory_space<vmem>>, vector<16x128xf32>,
    return
  }
  func.func @transform_0(%arg0: i32, %arg1: i32) -> (i32, i32) {
    %c0_i32 = arith.constant 0 : i32
    %c0_i32_0 = arith.constant 0 : i32
    return %arg0, %c0_i32 : i32, i32
  }
  func.func @transform_1(%arg0: i32, %arg1: i32) -> (i32, i32) {
    %c0_i32 = arith.constant 0 : i32
    %c0_i32_0 = arith.constant 0 : i32
    return %c0_i32, %arg1 : i32, i32
  }
  func.func @transform_2(%arg0: i32, %arg1: i32) -> (i32, i32) {
    %c0_i32 = arith.constant 0 : i32
    %c0_i32_0 = arith.constant 0 : i32
    return %c0_i32, %arg1 : i32, i32
  }
  func.func @transform_3(%arg0: i32, %arg1: i32) -> (i32, i32) {
    %c0_i32 = arith.constant 0 : i32
    return %arg0, %arg1 : i32, i32
  }
}

</mosaic_0001>

<bundles_post_ra>
// kernel: _lambda_.39
= control target key start
LH: loop header
LB: loop body
LE: loop exit
PB: predicated region body
PF: predicated region fallthrough
CT: control target
= control target key end

     0   :  { %v98_v0 = vmov 0.0   ;;  %vm99_vm0 = vmmov 0   ;;  %vm31_vm1 = vcmask 261120   ;;  %vm76_vm2 = vcmask 785408   ;;  %s147_s1 = inlined_call_operand.vmem [shape: f32[32,96], index: 1, kind: input, shape index: {}]   ;;  %s148_s0 = inlined_call_operand.vmem [shape: f32[16,32], index: 0, kind: input, shape index: {}]   ;;  %s149_s2 = inlined_call_operand.vmem [shape: f32[1,96], index: 2, kind: input, shape index: {}]   ;;  %s150_s3 = inlined_call_operand.vmem [shape: f32[16,96], index: 3, kind: output, shape index: {}]  }
   0x1   :  { %88 = vmatprep.subr.bf16.mxu0 %v98_v0  ;;  %v18_v1 = vld [vmem:[%s147_s1] sm:$0xff]  ;;  %v19_v2 = vld [vmem:[%s147_s1 + $0x8] sm:$0xff]  ;;  %v20_v3 = vld [vmem:[%s147_s1 + $0x10] sm:$0xff]  ;;  %92 = vmatprep.mubr.msk.bf16.mxu0 %vm99_vm0, %v98_v0 }
   0x2   :  { %v22_v4 = vpack.c.bf16 %v19_v2, %v18_v1  ;;  %v21_v5 = vld [vmem:[%s147_s1 + $0x18] sm:$0xff]  ;;  %v15_v7 = vld [vmem:[%s148_s0] sm:$0xff]  ;;  %v16_v8 = vld [vmem:[%s148_s0 + $0x8] sm:$0xff] }
   0x3   :  { %v23_v6 = vpack.c.bf16 %v21_v5, %v20_v3  ;;  %v17_v9 = vpack.c.bf16 %v16_v8, %v15_v7  ;;  %v83_v10 = vld [vmem:[%s149_s2] ss:$0 sm:$0xff] }
   0x4   :  { %89 = vmatpush3.bf16.msra.mxu0 %v22_v4 }
   0x5   :  { %90 = vmatprep.subr.bf16.mxu0 %v98_v0 }
   0x8   :  { %91 = vmatpush3.bf16.msra.mxu0 %v23_v6 }
   0xb   :  { %93 = vmatmul.mubr.msk.bf16.vlgmr.msra.gmra.mrb[0].mxu0 %vm31_vm1, %v17_v9 }
  0xde   :  { %v69_v11 = vpop.f32.mrb[0].mxu0 }
  0xdf   :  { %v70_v12 = vadd.f32 %v83_v10, %v69_v11  ;;  %v94_v13 = vpop.f32.mrb[1].mxu0 }
  0xe0   :  { %v72_v14 = vpop.f32.mrb[2].mxu0 }
  0xe1   :  { %77 = vst.msk [vmem:[%s150_s3] sm:$0xff] %vm76_vm2, %v70_v12  ;;  %v73_v15 = vadd.f32 %v83_v10, %v72_v14  ;;  %v95_v16 = vpop.f32.mrb[3].mxu0 }
  0xe3   :  { %78 = vst.msk [vmem:[%s150_s3 + $0x8] sm:$0xff] %vm76_vm2, %v73_v15 }

// kernel: _lambda_.41
= control target key start
LH: loop header
LB: loop body
LE: loop exit
PB: predicated region body
PF: predicated region fallthrough
CT: control target
= control target key end

     0   :  { %v97_v0 = vmov 0.0   ;;  %vm98_vm0 = vmmov 0   ;;  %vm31_vm1 = vcmask 261120   ;;  %s146_s1 = inlined_call_operand.vmem [shape: f32[32,32], index: 1, kind: input, shape index: {}]   ;;  %s147_s0 = inlined_call_operand.vmem [shape: f32[16,32], index: 0, kind: input, shape index: {}]   ;;  %s148_s2 = inlined_call_operand.vmem [shape: f32[1,32], index: 2, kind: input, shape index: {}]   ;;  %s149_s3 = inlined_call_operand.vmem [shape: f32[16,32], index: 3, kind: output, shape index: {}]  }
   0x1   :  { %87 = vmatprep.subr.bf16.mxu0 %v97_v0  ;;  %v18_v1 = vld [vmem:[%s146_s1] sm:$0xff]  ;;  %v19_v2 = vld [vmem:[%s146_s1 + $0x8] sm:$0xff]  ;;  %v20_v3 = vld [vmem:[%s146_s1 + $0x10] sm:$0xff]  ;;  %91 = vmatprep.mubr.msk.bf16.mxu0 %vm98_vm0, %v97_v0 }
   0x2   :  { %v22_v4 = vpack.c.bf16 %v19_v2, %v18_v1  ;;  %v21_v5 = vld [vmem:[%s146_s1 + $0x18] sm:$0xff]  ;;  %v15_v7 = vld [vmem:[%s147_s0] sm:$0xff]  ;;  %v16_v8 = vld [vmem:[%s147_s0 + $0x8] sm:$0xff] }
   0x3   :  { %v23_v6 = vpack.c.bf16 %v21_v5, %v20_v3  ;;  %v17_v9 = vpack.c.bf16 %v16_v8, %v15_v7  ;;  %v82_v10 = vld [vmem:[%s148_s2] ss:$0 sm:$0xff] }
   0x4   :  { %88 = vmatpush3.bf16.msra.mxu0 %v22_v4 }
   0x5   :  { %89 = vmatprep.subr.bf16.mxu0 %v97_v0 }
   0x8   :  { %90 = vmatpush3.bf16.msra.mxu0 %v23_v6 }
   0xb   :  { %92 = vmatmul.mubr.msk.bf16.vlgmr.msra.gmra.mrb[0].mxu0 %vm31_vm1, %v17_v9 }
  0xde   :  { %v69_v11 = vpop.f32.mrb[0].mxu0 }
  0xdf   :  { %v70_v12 = vadd.f32 %v82_v10, %v69_v11  ;;  %v93_v13 = vpop.f32.mrb[1].mxu0 }
  0xe0   :  { %v72_v14 = vpop.f32.mrb[2].mxu0 }
  0xe1   :  { %76 = vst.msk [vmem:[%s149_s3] sm:$0xff] %vm31_vm1, %v70_v12  ;;  %v73_v15 = vadd.f32 %v82_v10, %v72_v14  ;;  %v94_v16 = vpop.f32.mrb[3].mxu0 }
  0xe3   :  { %77 = vst.msk [vmem:[%s149_s3 + $0x8] sm:$0xff] %vm31_vm1, %v73_v15 }

// kernel: _lambda_.42
= control target key start
LH: loop header
LB: loop body
LE: loop exit
PB: predicated region body
PF: predicated region fallthrough
CT: control target
= control target key end

     0   :  { %vm23_vm0 = vcmask 261120   ;;  %s136_s0 = inlined_call_operand.vmem [shape: f32[16,32], index: 0, kind: input, shape index: {}]   ;;  %s137_s1 = inlined_call_operand.vmem [shape: f32[16,32], index: 1, kind: input, shape index: {}]   ;;  %s138_s2 = inlined_call_operand.vmem [shape: f32[1,32], index: 2, kind: input, shape index: {}]   ;;  %s139_s3 = inlined_call_operand.vmem [shape: f32[1,32], index: 3, kind: input, shape index: {}]   ;;  %s140_s4 = inlined_call_operand.vmem [shape: f32[16,32], index: 4, kind: output, shape index: {}]  }
   0x1   :  { %v17_v0 = vld [vmem:[%s136_s0] sm:$0xff]  ;;  %v18_v2 = vld [vmem:[%s136_s0 + $0x8] sm:$0xff] }
   0x2   :  { %v19_v1 = vld [vmem:[%s137_s1] sm:$0xff]  ;;  %v20_v4 = vld [vmem:[%s137_s1 + $0x8] sm:$0xff] }
   0x3   :  { %v21_v3 = vadd.f32 %v19_v1, %v17_v0  ;;  %v22_v5 = vadd.f32 %v20_v4, %v18_v2  ;;  %v75_v25 = vld [vmem:[%s138_s2] ss:$0 sm:$0xff] }
   0x4   :  { %v76_v27 = vld [vmem:[%s139_s3] ss:$0 sm:$0xff] }
   0x5   :  { %v24_v6 = vsel %vm23_vm0, %v21_v3, 0.0  ;;  %v27_v7 = vsel %vm23_vm0, %v22_v5, 0.0 }
   0x6   :  { %25 = vadd.xlane.f32.xlu0 %v24_v6 }
   0xa   :  { %28 = vadd.xlane.f32.xlu0 %v27_v7 }
  0x93   :  { %v26_v8 = vpop.xlane.xlu0 %25 }
  0x94   :  { %v31_v9 = vmul.f32 0.03125, %v26_v8 }
  0x96   :  { %v33_v10 = vsub.f32 %v21_v3, %v31_v9 }
  0x97   :  { %v29_v11 = vpop.xlane.xlu0 %28 }
  0x98   :  { %v32_v12 = vmul.f32 0.03125, %v29_v11  ;;  %v35_v13 = vmul.f32 %v33_v10, %v33_v10 }
  0x9a   :  { %v34_v14 = vsub.f32 %v22_v5, %v32_v12  ;;  %v37_v15 = vsel %vm23_vm0, %v35_v13, 0.0 }
  0x9b   :  { %38 = vadd.xlane.f32.xlu1 %v37_v15 }
  0x9c   :  { %v36_v16 = vmul.f32 %v34_v14, %v34_v14 }
  0x9e   :  { %v40_v17 = vsel %vm23_vm0, %v36_v16, 0.0 }
  0x9f   :  { %41 = vadd.xlane.f32.xlu1 %v40_v17 }
 0x128   :  { %v39_v18 = vpop.xlane.xlu1 %38 }
 0x129   :  { %v43_v19 = vmul.f32 0.03125, %v39_v18 }
 0x12b   :  { %v45_v20 = vadd.f32 1e-12, %v43_v19 }
 0x12c   :  { %v42_v21 = vpop.xlane.xlu1 %41 }
 0x12d   :  { %77 = vrsqrt.f32 %v45_v20  ;;  %v44_v22 = vmul.f32 0.03125, %v42_v21 }
 0x12f   :  { %v46_v23 = vadd.f32 1e-12, %v44_v22 }
 0x131   :  { %79 = vrsqrt.f32 %v46_v23 }
 0x137   :  { %v78_v24 = vpop.eup %77 }
 0x138   :  { %v49_v26 = vmul.f32 %v78_v24, %v33_v10 }
 0x13a   :  { %v58_v28 = vmul.f32 %v75_v25, %v49_v26 }
 0x13b   :  { %v80_v29 = vpop.eup %79 }
 0x13c   :  { %v67_v30 = vadd.f32 %v76_v27, %v58_v28  ;;  %v50_v31 = vmul.f32 %v80_v29, %v34_v14 }
 0x13e   :  { %69 = vst.msk [vmem:[%s140_s4] sm:$0xff] %vm23_vm0, %v67_v30  ;;  %v59_v32 = vmul.f32 %v75_v25, %v50_v31 }
 0x140   :  { %v68_v33 = vadd.f32 %v76_v27, %v59_v32 }
 0x142   :  { %70 = vst.msk [vmem:[%s140_s4 + $0x8] sm:$0xff] %vm23_vm0, %v68_v33 }

// kernel: _lambda_.44
= control target key start
LH: loop header
LB: loop body
LE: loop exit
PB: predicated region body
PF: predicated region fallthrough
CT: control target
= control target key end

     0   :  { %v110_v0 = vmov 0.0   ;;  %vm111_vm0 = vmmov 0   ;;  %vm37_vm1 = vcmask 523264   ;;  %vm82_vm2 = vcmask 261120   ;;  %s171_s1 = inlined_call_operand.vmem [shape: f32[64,32], index: 1, kind: input, shape index: {}]   ;;  %s172_s0 = inlined_call_operand.vmem [shape: f32[16,64], index: 0, kind: input, shape index: {}]   ;;  %s173_s2 = inlined_call_operand.vmem [shape: f32[1,32], index: 2, kind: input, shape index: {}]   ;;  %s174_s3 = inlined_call_operand.vmem [shape: f32[16,32], index: 3, kind: output, shape index: {}]  }
   0x1   :  { %96 = vmatprep.subr.bf16.mxu0 %v110_v0  ;;  %v18_v1 = vld [vmem:[%s171_s1] sm:$0xff]  ;;  %v19_v2 = vld [vmem:[%s171_s1 + $0x8] sm:$0xff]  ;;  %v20_v3 = vld [vmem:[%s171_s1 + $0x10] sm:$0xff]  ;;  %104 = vmatprep.mubr.msk.bf16.mxu0 %vm111_vm0, %v110_v0 }
   0x2   :  { %v26_v4 = vpack.c.bf16 %v19_v2, %v18_v1  ;;  %v21_v5 = vld [vmem:[%s171_s1 + $0x18] sm:$0xff]  ;;  %v22_v7 = vld [vmem:[%s171_s1 + $0x20] sm:$0xff]  ;;  %v23_v8 = vld [vmem:[%s171_s1 + $0x28] sm:$0xff] }
   0x3   :  { %v27_v6 = vpack.c.bf16 %v21_v5, %v20_v3  ;;  %v28_v9 = vpack.c.bf16 %v23_v8, %v22_v7  ;;  %v24_v10 = vld [vmem:[%s171_s1 + $0x30] sm:$0xff]  ;;  %v25_v11 = vld [vmem:[%s171_s1 + $0x38] sm:$0xff]  ;;  %v15_v13 = vld [vmem:[%s172_s0] sm:$0xff] }
   0x4   :  { %97 = vmatpush3.bf16.msra.mxu0 %v26_v4  ;;  %v29_v12 = vpack.c.bf16 %v25_v11, %v24_v10  ;;  %v16_v14 = vld [vmem:[%s172_s0 + $0x8] sm:$0xff]  ;;  %v89_v16 = vld [vmem:[%s173_s2] ss:$0 sm:$0xff] }
   0x5   :  { %98 = vmatprep.subr.bf16.mxu0 %v110_v0  ;;  %v17_v15 = vpack.c.bf16 %v16_v14, %v15_v13 }
   0x8   :  { %99 = vmatpush3.bf16.msra.mxu0 %v27_v6 }
   0x9   :  { %100 = vmatprep.subr.bf16.mxu0 %v110_v0 }
   0xc   :  { %101 = vmatpush3.bf16.msra.mxu0 %v28_v9 }
   0xd   :  { %102 = vmatprep.subr.bf16.mxu0 %v110_v0 }
  0x10   :  { %103 = vmatpush3.bf16.msra.mxu0 %v29_v12 }
  0x13   :  { %105 = vmatmul.mubr.msk.bf16.vlgmr.msra.gmra.mrb[0].mxu0 %vm37_vm1, %v17_v15 }
  0xe6   :  { %v75_v17 = vpop.f32.mrb[0].mxu0 }
  0xe7   :  { %v76_v18 = vadd.f32 %v89_v16, %v75_v17  ;;  %v106_v19 = vpop.f32.mrb[1].mxu0 }
  0xe8   :  { %v78_v20 = vpop.f32.mrb[2].mxu0 }
  0xe9   :  { %83 = vst.msk [vmem:[%s174_s3] sm:$0xff] %vm82_vm2, %v76_v18  ;;  %v79_v21 = vadd.f32 %v89_v16, %v78_v20  ;;  %v107_v22 = vpop.f32.mrb[3].mxu0 }
  0xeb   :  { %84 = vst.msk [vmem:[%s174_s3 + $0x8] sm:$0xff] %vm82_vm2, %v79_v21 }

// kernel: _lambda_.58
= control target key start
LH: loop header
LB: loop body
LE: loop exit
PB: predicated region body
PF: predicated region fallthrough
CT: control target
= control target key end

     0   :  { %v98_v0 = vmov 0.0   ;;  %vm99_vm0 = vmmov 0   ;;  %vm31_vm1 = vcmask 261120   ;;  %vm76_vm2 = vcmask 523264   ;;  %s147_s1 = inlined_call_operand.vmem [shape: f32[32,64], index: 1, kind: input, shape index: {}]   ;;  %s148_s0 = inlined_call_operand.vmem [shape: f32[16,32], index: 0, kind: input, shape index: {}]   ;;  %s149_s2 = inlined_call_operand.vmem [shape: f32[1,64], index: 2, kind: input, shape index: {}]   ;;  %s150_s3 = inlined_call_operand.vmem [shape: f32[16,64], index: 3, kind: output, shape index: {}]  }
   0x1   :  { %88 = vmatprep.subr.bf16.mxu0 %v98_v0  ;;  %v18_v1 = vld [vmem:[%s147_s1] sm:$0xff]  ;;  %v19_v2 = vld [vmem:[%s147_s1 + $0x8] sm:$0xff]  ;;  %v20_v3 = vld [vmem:[%s147_s1 + $0x10] sm:$0xff]  ;;  %92 = vmatprep.mubr.msk.bf16.mxu0 %vm99_vm0, %v98_v0 }
   0x2   :  { %v22_v4 = vpack.c.bf16 %v19_v2, %v18_v1  ;;  %v21_v5 = vld [vmem:[%s147_s1 + $0x18] sm:$0xff]  ;;  %v15_v7 = vld [vmem:[%s148_s0] sm:$0xff]  ;;  %v16_v8 = vld [vmem:[%s148_s0 + $0x8] sm:$0xff] }
   0x3   :  { %v23_v6 = vpack.c.bf16 %v21_v5, %v20_v3  ;;  %v17_v9 = vpack.c.bf16 %v16_v8, %v15_v7  ;;  %v83_v10 = vld [vmem:[%s149_s2] ss:$0 sm:$0xff] }
   0x4   :  { %89 = vmatpush3.bf16.msra.mxu0 %v22_v4 }
   0x5   :  { %90 = vmatprep.subr.bf16.mxu0 %v98_v0 }
   0x8   :  { %91 = vmatpush3.bf16.msra.mxu0 %v23_v6 }
   0xb   :  { %93 = vmatmul.mubr.msk.bf16.vlgmr.msra.gmra.mrb[0].mxu0 %vm31_vm1, %v17_v9 }
  0xde   :  { %v69_v11 = vpop.f32.mrb[0].mxu0 }
  0xdf   :  { %v70_v12 = vadd.f32 %v83_v10, %v69_v11  ;;  %v94_v13 = vpop.f32.mrb[1].mxu0 }
  0xe0   :  { %v72_v14 = vpop.f32.mrb[2].mxu0 }
  0xe1   :  { %77 = vst.msk [vmem:[%s150_s3] sm:$0xff] %vm76_vm2, %v70_v12  ;;  %v73_v15 = vadd.f32 %v83_v10, %v72_v14  ;;  %v95_v16 = vpop.f32.mrb[3].mxu0 }
  0xe3   :  { %78 = vst.msk [vmem:[%s150_s3 + $0x8] sm:$0xff] %vm76_vm2, %v73_v15 }

// kernel: _lambda_.40
= control target key start
LH: loop header
LB: loop body
LE: loop exit
PB: predicated region body
PF: predicated region fallthrough
CT: control target
= control target key end

     0   :  { %s2473_s18 = smov 0   ;;  %s2475_s19 = smov 0   ;;  %s2783_s0 = inlined_call_operand.vmem [shape: f32[2,2,4,32], index: 0, kind: input, shape index: {}]   ;;  %s2784_s1 = inlined_call_operand.vmem [shape: f32[2,2,4,32], index: 1, kind: input, shape index: {}]   ;;  %s2785_s2 = inlined_call_operand.vmem [shape: f32[2,2,4,32], index: 2, kind: input, shape index: {}]   ;;  %s2786_s3 = inlined_call_operand.vmem [shape: f32[2,2,4,4], index: 3, kind: input, shape index: {}]   ;;  %s2787_s4 = inlined_call_operand.vmem [shape: f32[1,32], index: 4, kind: input, shape index: {}]   ;;  %s2788_s5 = inlined_call_operand.vmem [shape: f32[2,2,4,32], index: 5, kind: output, shape index: {}]  }
   0x1   :  { %s2477_s20 = smov 0   ;;  %s2479_s21 = smov 0  }
   0x2   :  { %s2481_s22 = smov 0  }
   0x3 LB: > { %s24_s23 = sadd.s32 1, %s2423_s20  ;;  %s27_s24 = sadd.s32 1, %s2427_s21  ;;  %s2431_s22 = sphi %s2481_s22, %s15_s22   ;;  %s2427_s21 = sphi %s2479_s21, %s2792_s21   ;;  %s2423_s20 = sphi %s2477_s20, %s2791_s20   ;;  %s2419_s19 = sphi %s2475_s19, %s2790_s19   ;;  %s2415_s18 = sphi %s2473_s18, %s2789_s18  }
   0x4   : > { %p25_p0 = scmp.ge.s32.totalorder %s24_s23, 2  ;;  %p2159_p1 = scmp.ge.s32.totalorder %s2431_s22, 1 }
   0x5   : > { %p251_p2 = scmp.lt.s32.totalorder %s2431_s22, 5 }
   0x6   : > { %s2794_s23 = smov (%p25_p0, %s24_s23), 0  ;;  %s2796_s24 = smov (!%p25_p0, %s27_s24), %s2427_s21 }
   0x7   : > { %p252_p3 = pnand %p2159_p1, %p251_p2  ;;  %p29_p4 = scmp.ge.s32.totalorder %s2796_s24, 2 }
   0x8   : > { %p309_p5 = scmp.lt.s32.totalorder (!%p252_p3), %s2419_s19, 1  ;;  %p311_p6 = scmp.lt.s32.totalorder (!%p252_p3), %s2415_s18, 1 }
   0x9   : > { %s2798_s24 = smov (%p29_p4, %s2796_s24), 0  ;;  %255 = sbr.rel (%p252_p3) target bundleno = 1300 (0x514), region = 40 }
   0xa   : > { %p2170_p7 = scmp.ne.s32.totalorder (!%p252_p3), %s2415_s18, 0 }
  0x10   : > { %s2800_s19 = smov (!%p309_p5, %s2419_s19), 1  ;;  %vm353_vm0 = vcmask (!%p2170_p7), 64512   ;;  %vm358_vm1 = vcmask (!%p2170_p7), 57344   ;;  %v2433_v0 = vmov (!%p2170_p7), 0.0  }
  0x11   : > { %s312_s25 = scalar_select %p311_p6, %s2415_s18, 1 }
  0x12   : > { %s2160_s26 = sshll.u32 %s2800_s19, 1  ;;  %352 = sbr.rel (%p2170_p7) target bundleno = 25 (0x19), region = 44  ;;  %354 = vst.msk [vmem:[#allocation2] sm:$0xff] (!%p2170_p7), %vm353_vm0, %v2433_v0  ;;  %355 = vst.msk [vmem:[#allocation2 + $0x8] sm:$0xff] (!%p2170_p7), %vm353_vm0, %v2433_v0 }
  0x13   : > { %s314_s27 = sadd.s32 %s2160_s26, %s312_s25  ;;  %356 = vst.msk [vmem:[#allocation2 + $0x10] sm:$0xff] (!%p2170_p7), %vm353_vm0, %v2433_v0  ;;  %357 = vst.msk [vmem:[#allocation2 + $0x18] sm:$0xff] (!%p2170_p7), %vm353_vm0, %v2433_v0 }
  0x14   : > { %s2503_s28 = sshll.u32 %s314_s27, 2  ;;  %359 = vst.msk [vmem:[#allocation3] sm:$0x1] (!%p2170_p7), %vm358_vm1, %v2433_v0  ;;  %360 = vst.msk [vmem:[#allocation3 + $0x1] sm:$0x1] (!%p2170_p7), %vm358_vm1, %v2433_v0 }
  0x15   : > { %s316_s6 = scalar_lea.vmem %s2783_s0, %s2503_s28  ;;  %s324_s9 = scalar_lea.vmem %s2784_s1, %s2503_s28  ;;  %361 = vst.msk [vmem:[#allocation3 + $0x2] sm:$0x1] (!%p2170_p7), %vm358_vm1, %v2433_v0  ;;  %362 = vst.msk [vmem:[#allocation3 + $0x3] sm:$0x1] (!%p2170_p7), %vm358_vm1, %v2433_v0 }
  0x16   : > { %s332_s12 = scalar_lea.vmem %s2785_s2, %s2503_s28  ;;  %s340_s15 = scalar_lea.vmem %s2786_s3, %s2503_s28 }
  0x17   : > { %s348_s19 = scalar_lea.vmem %s2788_s5, %s2503_s28 }
  0x19 PF: > { %v364_v1 = vld [vmem:[%s324_s9] sm:$0xf]  ;;  %vm382_vm2 = vcmask 64512   ;;  %v2434_v2 = vmov 0.0   ;;  %vm2435_vm3 = vmmov 0   ;;  %s2436_s18 = smov 120   ;;  %v625_v0 = vlaneseq }
  0x1a   : > { %2235 = vmatprep.subr.mxu0 %v2434_v2  ;;  %2237 = vmatprep.mubr.msk.f32.mxu0 %vm2435_vm3, %v2434_v2  ;;  %v363_v3 = vld [vmem:[%s316_s6] sm:$0xf]  ;;  %s2437_s25 = smov 112   ;;  %s2438_s26 = smov 104   ;;  %vm461_vm5 = vcmask 27648   ;;  %vm374_vm6 = vcmp.gt.f32.partialorder %v364_v1, 0.0 }
  0x1b   : > { %2236 = vmatpush3.xpose.msk.msra.mxu0 %vm382_vm2, %v364_v1  ;;  %2240 = vmatprep.subr.mxu1 %v2434_v2  ;;  %v369_v4 = vmul.f32 1.442695, %v363_v3  ;;  %vm368_vm4 = vcmp.gt.f32.partialorder %v363_v3, 0.0  ;;  %v2552_v10 = vld [vmem:[%s340_s15] sm:$0xf]  ;;  %vm475_vm7 = vcmask 1043456  }
  0x1c   : > { %2242 = vmatprep.mubr.msk.f32.mxu1 %vm2435_vm3, %v2434_v2  ;;  %2250 = vmatprep.subr.mxu0 %v2434_v2  ;;  %v375_v14 = vmul.f32 1.442695, %v364_v1  ;;  %v365_v18 = vld [vmem:[%s332_s12] sm:$0xf]  ;;  %vm471_vm8 = vcmask 31744   ;;  %v2593_v30 = vld [vmem:[#allocation2 + $0x8] sm:$0xff] }
  0x1d   : > { %2365 = vpow2.f32 %v369_v4  ;;  %759 = vrot.lane.b32.xlu1 %v363_v3, %s2436_s18  ;;  %2241 = vmatpush3.msk.msra.mxu1 %vm475_vm7, %v365_v18  ;;  %v2577_v25 = vld [vmem:[#allocation2] sm:$0xff]  ;;  %v2605_v33 = vld [vmem:[#allocation2 + $0x10] sm:$0xff]  ;;  %v2622_v39 = vld [vmem:[#allocation2 + $0x18] sm:$0xff]  ;;  %s2439_s7 = smov 8   ;;  %s2440_s8 = smov 16   ;;  %vm631_vm9 = vcmask 60416  }
  0x1e   : > { %2238 = vmatmul.mubr.msk.f32.vlgmr.msra.gmra.mrb[0].mxu0 %vm382_vm2, %v363_v3  ;;  %2367 = vpow2.f32 %v375_v14  ;;  %2245 = vmatprep.subr.mxu1 %v2434_v2  ;;  %v2646_v4 = vld [vmem:[#allocation3 + $0x1] sm:$0x1]  ;;  %s2441_s9 = smov 24   ;;  %vm753_vm10 = vcmask 57344   ;;  %vm1937_vm11 = vcmask 257216   ;;  %vm1131_vm12 = vcmask 126016  }
  0x1f   : > { %2252 = vmatprep.mubr.msk.f32.mxu0 %vm2435_vm3, %v2434_v2  ;;  %2251 = vmatpush3.msk.msra.mxu0 %vm475_vm7, %v365_v18  ;;  %vm1534_vm13 = vcmask 191616   ;;  %vm1978_vm14 = vcmask 130048   ;;  %vm1980_vm15 = vcmask 195584   ;;  %vm2013_vm0 = vcmask 257024  }
  0x20   : > { %2260 = vmatprep.subr.mxu0 %v2434_v2 }
  0x27   : > { %v2366_v5 = vpop.eup %2365 }
  0x28   : > { %v2171_v6 = vadd.f32 -1.0, %v2366_v5  ;;  %v2368_v16 = vpop.eup %2367 }
  0x29   : > { %v2172_v17 = vadd.f32 -1.0, %v2368_v16 }
  0x2a   : > { %v372_v7 = vsel %vm368_vm4, %v363_v3, %v2171_v6  ;;  %v2650_v6 = vld [vmem:[#allocation3 + $0x2] sm:$0x1] }
  0x2b   : > { %v2536_v8 = vadd.f32 1.0, %v372_v7  ;;  %v378_v19 = vsel %vm374_vm6, %v364_v1, %v2172_v17 }
  0x2c   : > { %v2566_v20 = vadd.f32 1.0, %v378_v19 }
  0x2d   : > { %927 = vrot.lane.b32.xlu1 %v2536_v8, %s2436_s18 }
  0x31   : > { %1165 = vrot.lane.b32.xlu1 %v364_v1, %s2437_s25 }
  0x35   : > { %1163 = vrot.lane.b32.xlu1 %v363_v3, %s2437_s25 }
  0x39   : > { %1331 = vrot.lane.b32.xlu1 %v2536_v8, %s2437_s25 }
  0x3d   : > { %1568 = vrot.lane.b32.xlu1 %v364_v1, %s2438_s26 }
  0x41   : > { %1566 = vrot.lane.b32.xlu1 %v363_v3, %s2438_s26 }
  0x45   : > { %1252 = vrot.lane.b32.xlu1 %v365_v18, %s2437_s25 }
  0x49   : > { %1655 = vrot.lane.b32.xlu1 %v365_v18, %s2438_s26 }
  0x8f   : > { %v760_v24 = vpop.permute.xlu1 %759 }
  0x9f   : > { %v928_v27 = vpop.permute.xlu1 %927 }
  0xa3   : > { %v1166_v29 = vpop.permute.xlu1 %1165 }
  0xa7   : > { %v1164_v31 = vpop.permute.xlu1 %1163 }
  0xab   : > { %v1332_v32 = vpop.permute.xlu1 %1331 }
  0xaf   : > { %v1569_v34 = vpop.permute.xlu1 %1568 }
  0xb3   : > { %v1567_v35 = vpop.permute.xlu1 %1566 }
  0xf1   : > { %v455_v9 = vpop.f32.mrb[0].mxu0 }
  0xf2   : > { %v459_v11 = vmul.f32 0.35355338, %v455_v9  ;;  %v2239_v12 = vpop.f32.mrb[1].mxu0  ;;  %v2657_v9 = vld [vmem:[#allocation3 + $0x3] sm:$0x1] }
  0xf4   : > { %v460_v13 = vadd.f32 %v459_v11, %v2552_v10  ;;  %v745_v11 = vsel %vm631_vm9, %v2566_v20, 0.0 }
  0xf5   : > { %v746_v12 = vrot.slane %v745_v11, 4 }
  0xf6   : > { %v462_v15 = vsel %vm461_vm5, %v460_v13, -inf }
  0xf7   : > { %463 = vmax.xlane.f32.xlu0 %v462_v15 }
 0x10d   : > { %761 = vrot.lane.b32.xlu0 %v364_v1, %s2436_s18  ;;  %v2641_v1 = vshrl.u32 %v625_v0, 7 }
 0x10f   : > { %v2644_v3 = vsub.s32 0, %v2641_v1 }
 0x111   : > { %1021 = vrot.lane.b32.xlu0 %v2566_v20, %s2436_s18  ;;  %v1005_v5 = vrot.slane %v2646_v4, %v2644_v3  ;;  %v1409_v7 = vrot.slane %v2650_v6, %v2644_v3 }
 0x115   : > { %1424 = vrot.lane.b32.xlu0 %v2566_v20, %s2437_s25 }
 0x119   : > { %848 = vrot.lane.b32.xlu0 %v365_v18, %s2436_s18  ;;  %v2665_v18 = vld [vmem:[#allocation3] sm:$0x1] }
 0x11d   : > { %1734 = vrot.lane.b32.xlu0 %v2536_v8, %s2438_s26 }
 0x184   : > { %v464_v21 = vpop.xlane.xlu0 %463 }
 0x185   : > { %v465_v22 = vsub.f32 %v460_v13, %v464_v21  ;;  %v747_v13 = vadd.f32 %v746_v12, %v745_v11 }
 0x187   : > { %v466_v23 = vmul.f32 1.442695, %v465_v22  ;;  %v748_v14 = vrot.slane %v747_v13, 2 }
 0x188   : > { %v762_v28 = vpop.permute.xlu0 %761 }
 0x189   : > { %2369 = vpow2.f32 %v466_v23  ;;  %v749_v15 = vadd.f32 %v748_v14, %v747_v13  ;;  %v2442_v14 = vmov 1966171168  }
 0x18b   : > { %v750_v16 = vrot.slane %v749_v15, 1 }
 0x18c   : > { %v1022_v36 = vpop.permute.xlu0 %1021 }
 0x18d   : > { %v751_v17 = vadd.f32 %v750_v16, %v749_v15  ;;  %v1141_v15 = vunpack.c.l.s4 %v2442_v14 }
 0x18f   : > { %v752_v19 = vadd.f32 %v751_v17, %v2665_v18  ;;  %v1142_v17 = vunpack.c.0.s8 %v1141_v15 }
 0x190   : > { %v1425_v37 = vpop.permute.xlu0 %1424 }
 0x191   : > { %754 = vst.msk [vmem:[#allocation3] sm:$0x1] %vm753_vm10, %v752_v19  ;;  %v1145_v19 = vsub.s32 %v1142_v17, %v2641_v1 }
 0x193   : > { %v2579_v26 = vpop.eup %2369 }
 0x194   : > { %2243 = vmatmul.mubr.msk.f32.vlgmr.msra.gmra.mrb[0].mxu1 %vm471_vm8, %v2579_v26  ;;  %v2620_v38 = vpop.permute.xlu0 %848  ;;  %v468_v21 = vsel %vm461_vm5, %v2579_v26, 0.0 }
 0x195   : > { %2246 = vmatpush3.msra.mxu1 %v2577_v25  ;;  %2247 = vmatprep.mubr.msk.f32.mxu1 %vm2435_vm3, %v2434_v2 }
 0x196   : > { %2255 = vmatprep.subr.mxu1 %v2434_v2 }
 0x198   : > { %2248 = vmatmul.mubr.msk.f32.vlgmr.msra.gmra.mrb[2].mxu1 %vm382_vm2, %v2536_v8  ;;  %v1735_v40 = vpop.permute.xlu0 %1734 }
 0x199   : > { %2257 = vmatprep.mubr.msk.f32.mxu1 %vm2435_vm3, %v2434_v2 }
 0x19c   : > { %2256 = vmatpush3.xpose.msk.msra.mxu1 %vm382_vm2, %v762_v28 }
 0x19d   : > { %2265 = vmatprep.subr.mxu1 %v2434_v2 }
 0x19f   : > { %2258 = vmatmul.mubr.msk.f32.vlgmr.msra.gmra.mrb[4].mxu1 %vm382_vm2, %v760_v24  ;;  %v1253_v24 = vpop.permute.xlu1 %1252 }
 0x1a0   : > { %2266 = vmatpush3.msra.mxu1 %v2593_v30  ;;  %2267 = vmatprep.mubr.msk.f32.mxu1 %vm2435_vm3, %v2434_v2 }
 0x1a1   : > { %2275 = vmatprep.subr.mxu1 %v2434_v2 }
 0x1a3   : > { %2268 = vmatmul.mubr.msk.f32.vlgmr.msra.gmra.mrb[6].mxu1 %vm382_vm2, %v928_v27  ;;  %v1656_v27 = vpop.permute.xlu1 %1655 }
 0x1a4   : > { %2277 = vmatprep.mubr.msk.f32.mxu1 %vm2435_vm3, %v2434_v2 }
 0x1a7   : > { %2276 = vmatpush3.xpose.msk.msra.mxu1 %vm382_vm2, %v1166_v29 }
 0x1a8   : > { %2285 = vmatprep.subr.mxu1 %v2434_v2 }
 0x1aa   : > { %2278 = vmatmul.mubr.msk.f32.vlgmr.msra.gmra.mrb[8].mxu1 %vm382_vm2, %v1164_v31 }
 0x1ab   : > { %2286 = vmatpush3.msra.mxu1 %v2605_v33  ;;  %2287 = vmatprep.mubr.msk.f32.mxu1 %vm2435_vm3, %v2434_v2 }
 0x1ac   : > { %2295 = vmatprep.subr.mxu1 %v2434_v2 }
 0x1ae   : > { %2288 = vmatmul.mubr.msk.f32.vlgmr.msra.gmra.mrb[10].mxu1 %vm382_vm2, %v1332_v32 }
 0x1af   : > { %2297 = vmatprep.mubr.msk.f32.mxu1 %vm2435_vm3, %v2434_v2 }
 0x1b2   : > { %2296 = vmatpush3.xpose.msk.msra.mxu1 %vm382_vm2, %v1569_v34 }
 0x1b3   : > { %2305 = vmatprep.subr.mxu1 %v2434_v2 }
 0x1b5   : > { %2298 = vmatmul.mubr.msk.f32.vlgmr.msra.gmra.mrb[12].mxu1 %vm382_vm2, %v1567_v35 }
 0x1b6   : > { %2307 = vmatprep.mubr.msk.f32.mxu1 %vm2435_vm3, %v2434_v2  ;;  %2306 = vmatpush3.msra.mxu1 %v2622_v39 }
 0x1b9   : > { %2308 = vmatmul.mubr.msk.f32.vlgmr.msra.gmra.mrb[14].mxu1 %vm382_vm2, %v1735_v40 }
 0x267   : > { %v2626_v41 = vpop.f32.mrb[0].mxu1 }
 0x268   : > { %v2244_v42 = vpop.f32.mrb[1].mxu1 }
 0x26b   : > { %v2628_v43 = vpop.f32.mrb[2].mxu1 }
 0x26c   : > { %v2249_v44 = vpop.f32.mrb[3].mxu1 }
 0x272   : > { %v833_v45 = vpop.f32.mrb[4].mxu1 }
 0x273   : > { %v837_v46 = vmul.f32 0.35355338, %v833_v45  ;;  %v2259_v47 = vpop.f32.mrb[5].mxu1 }
 0x275   : > { %v838_v48 = vadd.f32 %v837_v46, %v2552_v10 }
 0x276   : > { %v2631_v49 = vpop.f32.mrb[6].mxu1 }
 0x277   : > { %v2269_v50 = vpop.f32.mrb[7].mxu1  ;;  %v839_v51 = vsel %vm461_vm5, %v838_v48, -inf }
 0x278   : > { %840 = vmax.xlane.f32.xlu1 %v839_v51 }
 0x27d   : > { %v1237_v52 = vpop.f32.mrb[8].mxu1 }
 0x27e   : > { %v1241_v53 = vmul.f32 0.35355338, %v1237_v52  ;;  %v2279_v54 = vpop.f32.mrb[9].mxu1 }
 0x27f   : > { %v628_v54 = vrot.slane %v2665_v18, %v2644_v3 }
 0x280   : > { %v1242_v55 = vadd.f32 %v1241_v53, %v2552_v10 }
 0x281   : > { %v2635_v56 = vpop.f32.mrb[10].mxu1 }
 0x282   : > { %v1243_v57 = vsel %vm461_vm5, %v1242_v55, -inf  ;;  %v2289_v58 = vpop.f32.mrb[11].mxu1 }
 0x283   : > { %1244 = vmax.xlane.f32.xlu0 %v1243_v57  ;;  %v630_v57 = vmul.f32 %v628_v54, %v2536_v8 }
 0x285   : > { %v632_v58 = vsel %vm631_vm9, %v630_v57, 0.0 }
 0x288   : > { %v1640_v59 = vpop.f32.mrb[12].mxu1 }
 0x289   : > { %v1644_v60 = vmul.f32 0.35355338, %v1640_v59  ;;  %v2299_v61 = vpop.f32.mrb[13].mxu1 }
 0x28b   : > { %v1645_v62 = vadd.f32 %v1644_v60, %v2552_v10  ;;  %v1812_v10 = vrot.slane %v2657_v9, %v2644_v3 }
 0x28c   : > { %v2671_v22 = vpop.f32.mrb[14].mxu1 }
 0x28d   : > { %v1646_v63 = vsel %vm461_vm5, %v1645_v62, -inf  ;;  %v2309_v23 = vpop.f32.mrb[15].mxu1 }
 0x28e   : > { %1647 = vmax.xlane.f32.xlu1 %v1646_v63 }
 0x2b0   : > { %1024 = vxpose.xlu0.b32.start.end [1/1] (short) (narrow) %v1022_v36, 8 }
 0x2b4   : > { %1427 = vxpose.xlu0.b32.start.end [1/1] (short) (narrow) %v1425_v37, 8 }
 0x2c1   : > { %638 = vxpose.xlu1.b32.start.end [1/1] (short) (narrow) %v2566_v20, 8 }
 0x2dd   : > { %1827 = vrot.lane.b32.xlu0 %v2566_v20, %s2438_s26 }
 0x2df   : > { %1006 = vrot.lane.b32.xlu1 %v1005_v5, %s2439_s7 }
 0x2e3   : > { %1410 = vrot.lane.b32.xlu1 %v1409_v7, %s2440_s8 }
 0x2e7   : > { %1813 = vrot.lane.b32.xlu1 %v1812_v10, %s2441_s9 }
 0x305   : > { %v841_v28 = vpop.xlane.xlu1 %840 }
 0x306   : > { %v842_v29 = vsub.f32 %v838_v48, %v841_v28 }
 0x308   : > { %v843_v31 = vmul.f32 1.442695, %v842_v29  ;;  %v1132_v29 = vsel %vm1131_vm12, %v2566_v20, 0.0 }
 0x30a   : > { %2371 = vpow2.f32 %v843_v31  ;;  %v1133_v31 = vrot.slane %v1132_v29, 4 }
 0x30b   : > { %469 = vadd.xlane.f32.xlu1 %v468_v21 }
 0x310   : > { %v1245_v32 = vpop.xlane.xlu0 %1244 }
 0x311   : > { %v1246_v34 = vsub.f32 %v1242_v55, %v1245_v32  ;;  %v1134_v32 = vadd.f32 %v1133_v31, %v1132_v29 }
 0x313   : > { %v1247_v36 = vmul.f32 1.442695, %v1246_v34  ;;  %v1535_v34 = vsel %vm1534_vm13, %v2566_v20, 0.0 }
 0x314   : > { %v2372_v42 = vpop.eup %2371 }
 0x315   : > { %2373 = vpow2.f32 %v1247_v36  ;;  %v1536_v36 = vrot.slane %v1535_v34, 4 }
 0x31b   : > { %v1648_v35 = vpop.xlane.xlu1 %1647 }
 0x31c   : > { %v1649_v40 = vsub.f32 %v1645_v62, %v1648_v35  ;;  %v1135_v35 = vrot.slane %v1134_v32, 2 }
 0x31e   : > { %v1650_v44 = vmul.f32 1.442695, %v1649_v40  ;;  %v1136_v1 = vadd.f32 %v1135_v35, %v1134_v32 }
 0x31f   : > { %v2374_v46 = vpop.eup %2373 }
 0x320   : > { %2375 = vpow2.f32 %v1650_v44  ;;  %v1249_v7 = vsel %vm461_vm5, %v2374_v46, 0.0  ;;  %v1137_v40 = vrot.slane %v1136_v1, 1 }
 0x32a   : > { %v2376_v48 = vpop.eup %2375 }
 0x32b   : > { %v1652_v11 = vsel %vm461_vm5, %v2376_v48, 0.0 }
 0x330   : > { %v1040_v26 = vpop.trf.xlu0 }
 0x334   : > { %v1443_v45 = vpop.trf.xlu0 }
 0x341   : > { %v654_v37 = vpop.trf.xlu1 }
 0x342   : > { %2253 = vmatmul.mubr.msk.f32.vlgmr.msra.gmra.mrb[2].mxu0 %vm471_vm8, %v654_v37  ;;  %v1537_v37 = vadd.f32 %v1536_v36, %v1535_v34 }
 0x343   : > { %2261 = vmatpush3.msk.msra.mxu0 %vm475_vm7, %v2620_v38  ;;  %2262 = vmatprep.mubr.msk.f32.mxu0 %vm2435_vm3, %v2434_v2 }
 0x344   : > { %2270 = vmatprep.subr.mxu0 %v2434_v2 }
 0x346   : > { %2263 = vmatmul.mubr.msk.f32.vlgmr.msra.gmra.mrb[4].mxu0 %vm471_vm8, %v2372_v42 }
 0x347   : > { %2271 = vmatpush3.msk.msra.mxu0 %vm475_vm7, %v2620_v38  ;;  %2272 = vmatprep.mubr.msk.f32.mxu0 %vm2435_vm3, %v2434_v2 }
 0x348   : > { %2280 = vmatprep.subr.mxu0 %v2434_v2 }
 0x34a   : > { %2273 = vmatmul.mubr.msk.f32.vlgmr.msra.gmra.mrb[6].mxu0 %vm471_vm8, %v1040_v26  ;;  %v1538_v26 = vrot.slane %v1537_v37, 2 }
 0x34b   : > { %2281 = vmatpush3.msk.msra.mxu0 %vm475_vm7, %v1253_v24  ;;  %2282 = vmatprep.mubr.msk.f32.mxu0 %vm2435_vm3, %v2434_v2 }
 0x34c   : > { %2290 = vmatprep.subr.mxu0 %v2434_v2  ;;  %v1539_v44 = vadd.f32 %v1538_v26, %v1537_v37  ;;  %v367_v26 = vld [vmem:[%s2787_s4] sm:$0x1] }
 0x34e   : > { %2283 = vmatmul.mubr.msk.f32.vlgmr.msra.gmra.mrb[8].mxu0 %vm471_vm8, %v2374_v46  ;;  %v1540_v46 = vrot.slane %v1539_v44, 1 }
 0x34f   : > { %2291 = vmatpush3.msk.msra.mxu0 %vm475_vm7, %v1253_v24  ;;  %v1828_v38 = vpop.permute.xlu0 %1827  ;;  %2292 = vmatprep.mubr.msk.f32.mxu0 %vm2435_vm3, %v2434_v2 }
 0x350   : > { %1830 = vxpose.xlu0.b32.start.end [1/1] (short) (narrow) %v1828_v38, 8  ;;  %2300 = vmatprep.subr.mxu0 %v2434_v2 }
 0x351   : > { %v1007_v47 = vpop.permute.xlu1 %1006 }
 0x352   : > { %2293 = vmatmul.mubr.msk.f32.vlgmr.msra.gmra.mrb[10].mxu0 %vm471_vm8, %v1443_v45  ;;  %v1009_v55 = vmul.f32 %v1007_v47, %v2536_v8  ;;  %v1541_v47 = vadd.f32 %v1540_v46, %v1539_v44  ;;  %v2004_v44 = vsub.f32 1.0, %v367_v26 }
 0x353   : > { %2301 = vmatpush3.msk.msra.mxu0 %vm475_vm7, %v1656_v27  ;;  %2302 = vmatprep.mubr.msk.f32.mxu0 %vm2435_vm3, %v2434_v2 }
 0x354   : > { %2310 = vmatprep.subr.mxu0 %v2434_v2 }
 0x355   : > { %v1411_v50 = vpop.permute.xlu1 %1410 }
 0x356   : > { %v1413_v51 = vmul.f32 %v1411_v50, %v2536_v8  ;;  %2303 = vmatmul.mubr.msk.f32.vlgmr.msra.gmra.mrb[12].mxu0 %vm471_vm8, %v2376_v48  ;;  %v1549_v48 = vrot.slane %v1541_v47, %v1145_v19  ;;  %v2001_v47 = vrot.slane %v367_v26, %v2644_v3 }
 0x357   : > { %2311 = vmatpush3.msk.msra.mxu0 %vm475_vm7, %v1656_v27  ;;  %2312 = vmatprep.mubr.msk.f32.mxu0 %vm2435_vm3, %v2434_v2 }
 0x358   : > { %1415 = vrot.lane.b32.xlu1 %v1413_v51, %s2437_s25  ;;  %v1556_v50 = vrot.slane %v1549_v48, %v1145_v19 }
 0x359   : > { %v1814_v52 = vpop.permute.xlu1 %1813 }
 0x35a   : > { %v1816_v53 = vmul.f32 %v1814_v52, %v2536_v8  ;;  %v845_v8 = vsel %vm461_vm5, %v2372_v42, 0.0  ;;  %v1138_v42 = vadd.f32 %v1137_v40, %v1136_v1 }
 0x35c   : > { %1818 = vrot.lane.b32.xlu1 %v1816_v53, %s2438_s26  ;;  %v1146_v45 = vrot.slane %v1138_v42, %v1145_v19 }
 0x35e   : > { %v1153_v38 = vrot.slane %v1146_v45, %v1145_v19 }
 0x379   : > { %1011 = vrot.lane.b32.xlu0 %v1009_v55, %s2436_s18 }
 0x380   : > { %633 = vadd.xlane.f32.xlu1 %v632_v58 }
 0x398   : > { %v470_v2 = vpop.xlane.xlu1 %469 }
 0x399   : > { %2377 = vrcp.f32 %v470_v2 }
 0x3a3   : > { %v2378_v59 = vpop.eup %2377 }
 0x3a4   : > { %v2715_v60 = vmul.f32 %v2378_v59, %v2626_v41  ;;  %v1938_v41 = vsel %vm1937_vm11, %v2566_v20, 0.0 }
 0x3a5   : > { %v1939_v10 = vrot.slane %v1938_v41, 4 }
 0x3a7   : > { %v1940_v12 = vadd.f32 %v1939_v10, %v1938_v41 }
 0x3a9   : > { %v1941_v13 = vrot.slane %v1940_v12, 2 }
 0x3ab   : > { %v1942_v16 = vadd.f32 %v1941_v13, %v1940_v12 }
 0x3ad   : > { %v1943_v18 = vrot.slane %v1942_v16, 1 }
 0x3af   : > { %v1944_v21 = vadd.f32 %v1943_v18, %v1942_v16 }
 0x3b1   : > { %v1952_v23 = vrot.slane %v1944_v21, %v1145_v19 }
 0x3b3   : > { %v1959_v28 = vrot.slane %v1952_v23, %v1145_v19 }
 0x3ca   : > { %v1416_v61 = vpop.permute.xlu1 %1415 }
 0x3cb   : > { %v1418_v62 = vsel %vm631_vm9, %v1416_v61, 0.0 }
 0x3cc   : > { %1419 = vadd.xlane.f32.xlu0 %v1418_v62 }
 0x3ce   : > { %v1819_v63 = vpop.permute.xlu1 %1818 }
 0x3cf   : > { %v1821_v0 = vsel %vm631_vm9, %v1819_v63, 0.0 }
 0x3d0   : > { %1822 = vadd.xlane.f32.xlu0 %v1821_v0  ;;  %v1846_v5 = vpop.trf.xlu0 }
 0x3d1   : > { %2313 = vmatmul.mubr.msk.f32.vlgmr.msra.gmra.mrb[14].mxu0 %vm471_vm8, %v1846_v5 }
 0x3d4   : > { %846 = vadd.xlane.f32.xlu0 %v845_v8 }
 0x3d8   : > { %1250 = vadd.xlane.f32.xlu0 %v1249_v7 }
 0x3dc   : > { %1653 = vadd.xlane.f32.xlu0 %v1652_v11 }
 0x3eb   : > { %v1012_v24 = vpop.permute.xlu0 %1011 }
 0x3ec   : > { %v1014_v27 = vsel %vm631_vm9, %v1012_v24, 0.0 }
 0x3ed   : > { %1015 = vadd.xlane.f32.xlu1 %v1014_v27 }
 0x3f2   : > { %1960 = vrot.lane.b32.xlu0 %v1959_v28, %s2438_s26 }
 0x3fe   : > { %1154 = vrot.lane.b32.xlu1 %v1153_v38, %s2436_s18  ;;  %v2009_v38 = vrot.slane %v2004_v44, %v2644_v3 }
 0x402   : > { %1557 = vrot.lane.b32.xlu1 %v1556_v50, %s2437_s25 }
 0x40d   : > { %v634_v14 = vpop.xlane.xlu1 %633 }
 0x40e   : > { %v635_v36 = vadd.f32 1e-06, %v634_v14 }
 0x415   : > { %v739_v51 = vpop.f32.mrb[2].mxu0 }
 0x416   : > { %v743_v20 = vadd.f32 %v739_v51, %v2577_v25  ;;  %v2254_v52 = vpop.f32.mrb[3].mxu0 }
 0x418   : > { %744 = vst.msk [vmem:[#allocation2] sm:$0xff] %vm382_vm2, %v743_v20 }
 0x419   : > { %v921_v53 = vpop.f32.mrb[4].mxu0 }
 0x41a   : > { %v2264_v54 = vpop.f32.mrb[5].mxu0 }
 0x41d   : > { %v1125_v55 = vpop.f32.mrb[6].mxu0 }
 0x41e   : > { %v1129_v57 = vadd.f32 %v1125_v55, %v2593_v30  ;;  %v2274_v58 = vpop.f32.mrb[7].mxu0 }
 0x420   : > { %1130 = vst.msk [vmem:[#allocation2 + $0x8] sm:$0xff] %vm382_vm2, %v1129_v57 }
 0x421   : > { %v1325_v2 = vpop.f32.mrb[8].mxu0 }
 0x422   : > { %v2284_v59 = vpop.f32.mrb[9].mxu0 }
 0x425   : > { %v1528_v61 = vpop.f32.mrb[10].mxu0 }
 0x426   : > { %v1532_v62 = vadd.f32 %v1528_v61, %v2605_v33  ;;  %v2294_v63 = vpop.f32.mrb[11].mxu0 }
 0x428   : > { %1533 = vst.msk [vmem:[#allocation2 + $0x10] sm:$0xff] %vm382_vm2, %v1532_v62 }
 0x429   : > { %v1728_v25 = vpop.f32.mrb[12].mxu0 }
 0x42a   : > { %v2304_v0 = vpop.f32.mrb[13].mxu0 }
 0x459   : > { %v1420_v5 = vpop.xlane.xlu0 %1419 }
 0x45d   : > { %v1823_v8 = vpop.xlane.xlu0 %1822 }
 0x45e   : > { %v1824_v7 = vadd.f32 1e-06, %v1823_v8 }
 0x460   : > { %2379 = vrcp.f32 %v1824_v7 }
 0x461   : > { %v847_v41 = vpop.xlane.xlu0 %846 }
 0x465   : > { %v1251_v10 = vpop.xlane.xlu0 %1250 }
 0x469   : > { %v1654_v30 = vpop.xlane.xlu0 %1653 }
 0x46a   : > { %v2380_v11 = vpop.eup %2379 }
 0x46b   : > { %v1826_v12 = vmul.f32 %v2380_v11, %v2671_v22 }
 0x46d   : > { %1991 = vrot.lane.b32.xlu0 %v1826_v12, %s2441_s9  ;;  %v1961_v13 = vpop.permute.xlu0 %1960 }
 0x46e   : > { %v1963_v33 = vadd.f32 %v1961_v13, %v2657_v9  ;;  %v1421_v9 = vadd.f32 1e-06, %v1420_v5 }
 0x470   : > { %1964 = vst.msk [vmem:[#allocation3 + $0x3] sm:$0x1] %vm753_vm10, %v1963_v33 }
 0x47a   : > { %v1016_v15 = vpop.xlane.xlu1 %1015 }
 0x47b   : > { %v1017_v16 = vadd.f32 1e-06, %v1016_v15 }
 0x47d   : > { %2381 = vrcp.f32 %v1017_v16 }
 0x47e   : > { %v1155_v17 = vpop.permute.xlu1 %1154  ;;  %2383 = vrcp.f32 %v847_v41 }
 0x47f   : > { %v1157_v18 = vadd.f32 %v1155_v17, %v2646_v4  ;;  %2385 = vrcp.f32 %v1251_v10 }
 0x480   : > { %2387 = vrcp.f32 %v1654_v30 }
 0x481   : > { %1158 = vst.msk [vmem:[#allocation3 + $0x1] sm:$0x1] %vm753_vm10, %v1157_v18  ;;  %2389 = vrcp.f32 %v1421_v9 }
 0x482   : > { %v1558_v19 = vpop.permute.xlu1 %1557  ;;  %2391 = vrcp.f32 %v635_v36 }
 0x483   : > { %v1560_v22 = vadd.f32 %v1558_v19, %v2650_v6 }
 0x485   : > { %1561 = vst.msk [vmem:[#allocation3 + $0x2] sm:$0x1] %vm753_vm10, %v1560_v22 }
 0x487   : > { %v2382_v21 = vpop.eup %2381 }
 0x488   : > { %v1019_v23 = vmul.f32 %v2382_v21, %v2631_v49  ;;  %v2384_v24 = vpop.eup %2383 }
 0x489   : > { %v926_v27 = vmul.f32 %v2384_v24, %v921_v53  ;;  %v2386_v28 = vpop.eup %2385 }
 0x48a   : > { %1983 = vrot.lane.b32.xlu1 %v1019_v23, %s2439_s7  ;;  %v1330_v4 = vmul.f32 %v2386_v28, %v1325_v2  ;;  %v2388_v29 = vpop.eup %2387 }
 0x48b   : > { %v1733_v6 = vmul.f32 %v2388_v29, %v1728_v25  ;;  %v2390_v31 = vpop.eup %2389 }
 0x48c   : > { %v1423_v32 = vmul.f32 %v2390_v31, %v2635_v56  ;;  %v2392_v42 = vpop.eup %2391 }
 0x48e   : > { %1966 = vrot.lane.b32.xlu1 %v926_v27, %s2439_s7 }
 0x492   : > { %1970 = vrot.lane.b32.xlu1 %v1330_v4, %s2440_s8 }
 0x496   : > { %1974 = vrot.lane.b32.xlu1 %v1733_v6, %s2441_s9 }
 0x49a   : > { %1987 = vrot.lane.b32.xlu1 %v1423_v32, %s2440_s8 }
 0x4a4   : > { %v1931_v49 = vpop.f32.mrb[14].mxu0 }
 0x4a5   : > { %v1935_v34 = vadd.f32 %v1931_v49, %v2622_v39  ;;  %v2314_v35 = vpop.f32.mrb[15].mxu0  ;;  %v637_v39 = vmul.f32 %v2392_v42, %v2628_v43 }
 0x4a7   : > { %1936 = vst.msk [vmem:[#allocation2 + $0x18] sm:$0xff] %vm382_vm2, %v1935_v34 }
 0x4df   : > { %v1992_v20 = vpop.permute.xlu0 %1991 }
 0x4fc   : > { %v1984_v1 = vpop.permute.xlu1 %1983 }
 0x4fd   : > { %v1994_v48 = vsel %vm382_vm2, %v637_v39, %v1984_v1 }
 0x500   : > { %v1967_v37 = vpop.permute.xlu1 %1966 }
 0x501   : > { %v1977_v45 = vsel %vm382_vm2, %v2715_v60, %v1967_v37 }
 0x504   : > { %v1971_v40 = vpop.permute.xlu1 %1970 }
 0x505   : > { %v1979_v46 = vsel %vm1978_vm14, %v1977_v45, %v1971_v40 }
 0x508   : > { %v1975_v56 = vpop.permute.xlu1 %1974 }
 0x509   : > { %v1981_v50 = vsel %vm1980_vm15, %v1979_v46, %v1975_v56 }
 0x50a   : > { %v2011_v54 = vmul.f32 %v2009_v38, %v1981_v50 }
 0x50c   : > { %v1988_v51 = vpop.permute.xlu1 %1987 }
 0x50d   : > { %v1995_v52 = vsel %vm1978_vm14, %v1994_v48, %v1988_v51 }
 0x50e   : > { %v1996_v53 = vsel %vm1980_vm15, %v1995_v52, %v1992_v20 }
 0x50f   : > { %v2003_v55 = vmul.f32 %v2001_v47, %v1996_v53 }
 0x511   : > { %v2012_v57 = vadd.f32 %v2011_v54, %v2003_v55 }
 0x513   : > { %2014 = vst.msk [vmem:[%s348_s19] sm:$0xf] %vm2013_vm0, %v2012_v57 }
 0x514 PF: > { %s15_s22 = sadd.s32 1, %s2431_s22   ;;  %s2789_s18 = smov %s2423_s20 }
 0x515   : > { %p12_p8 = scmp.ge.s32.totalorder %s15_s22, 6   ;;  %s2790_s19 = smov %s2427_s21 }
 0x516   : > { %s2791_s20 = smov %s2794_s23  ;;  %s2792_s21 = smov %s2798_s24 }
 0x517   :  { %14 = sbr.rel (!%p12_p8) target bundleno = 3 (0x3), region = 89 }

// kernel: _lambda_.43
= control target key start
LH: loop header
LB: loop body
LE: loop exit
PB: predicated region body
PF: predicated region fallthrough
CT: control target
= control target key end

     0   :  { %v100_v0 = vmov 0.0   ;;  %vm101_vm0 = vmmov 0   ;;  %vm31_vm1 = vcmask 261120   ;;  %vm78_vm2 = vcmask 523264   ;;  %s149_s1 = inlined_call_operand.vmem [shape: f32[32,64], index: 1, kind: input, shape index: {}]   ;;  %s150_s0 = inlined_call_operand.vmem [shape: f32[16,32], index: 0, kind: input, shape index: {}]   ;;  %s151_s2 = inlined_call_operand.vmem [shape: f32[1,64], index: 2, kind: input, shape index: {}]   ;;  %s152_s3 = inlined_call_operand.vmem [shape: f32[16,64], index: 3, kind: output, shape index: {}]  }
   0x1   :  { %90 = vmatprep.subr.bf16.mxu0 %v100_v0  ;;  %v18_v1 = vld [vmem:[%s149_s1] sm:$0xff]  ;;  %v19_v2 = vld [vmem:[%s149_s1 + $0x8] sm:$0xff]  ;;  %v20_v3 = vld [vmem:[%s149_s1 + $0x10] sm:$0xff]  ;;  %94 = vmatprep.mubr.msk.bf16.mxu0 %vm101_vm0, %v100_v0 }
   0x2   :  { %v22_v4 = vpack.c.bf16 %v19_v2, %v18_v1  ;;  %v21_v5 = vld [vmem:[%s149_s1 + $0x18] sm:$0xff]  ;;  %v15_v7 = vld [vmem:[%s150_s0] sm:$0xff]  ;;  %v16_v8 = vld [vmem:[%s150_s0 + $0x8] sm:$0xff] }
   0x3   :  { %v23_v6 = vpack.c.bf16 %v21_v5, %v20_v3  ;;  %v17_v9 = vpack.c.bf16 %v16_v8, %v15_v7  ;;  %v85_v10 = vld [vmem:[%s151_s2] ss:$0 sm:$0xff] }
   0x4   :  { %91 = vmatpush3.bf16.msra.mxu0 %v22_v4 }
   0x5   :  { %92 = vmatprep.subr.bf16.mxu0 %v100_v0 }
   0x8   :  { %93 = vmatpush3.bf16.msra.mxu0 %v23_v6 }
   0xb   :  { %95 = vmatmul.mubr.msk.bf16.vlgmr.msra.gmra.mrb[0].mxu0 %vm31_vm1, %v17_v9 }
  0xde   :  { %v69_v11 = vpop.f32.mrb[0].mxu0 }
  0xdf   :  { %v70_v12 = vadd.f32 %v85_v10, %v69_v11  ;;  %v96_v13 = vpop.f32.mrb[1].mxu0 }
  0xe0   :  { %v72_v14 = vpop.f32.mrb[2].mxu0 }
  0xe1   :  { %v76_v15 = vmax.f32 %v70_v12, 0.0  ;;  %v73_v16 = vadd.f32 %v85_v10, %v72_v14  ;;  %v97_v17 = vpop.f32.mrb[3].mxu0 }
  0xe3   :  { %79 = vst.msk [vmem:[%s152_s3] sm:$0xff] %vm78_vm2, %v76_v15  ;;  %v77_v18 = vmax.f32 %v73_v16, 0.0 }
  0xe5   :  { %80 = vst.msk [vmem:[%s152_s3 + $0x8] sm:$0xff] %vm78_vm2, %v77_v18 }

// kernel: _lambda_.77
= control target key start
LH: loop header
LB: loop body
LE: loop exit
PB: predicated region body
PF: predicated region fallthrough
CT: control target
= control target key end

     0   :  { %v97_v0 = vmov 0.0   ;;  %vm98_vm0 = vmmov 0   ;;  %vm31_vm1 = vcmask 261120   ;;  %s146_s1 = inlined_call_operand.vmem [shape: f32[32,128], index: 1, kind: input, shape index: {}]   ;;  %s147_s0 = inlined_call_operand.vmem [shape: f32[16,32], index: 0, kind: input, shape index: {}]   ;;  %s148_s2 = inlined_call_operand.vmem [shape: f32[1,128], index: 2, kind: input, shape index: {}]   ;;  %s149_s3 = inlined_call_operand.vmem [shape: f32[16,128], index: 3, kind: output, shape index: {}]  }
   0x1   :  { %87 = vmatprep.subr.bf16.mxu0 %v97_v0  ;;  %v18_v1 = vld [vmem:[%s146_s1] sm:$0xff]  ;;  %v19_v2 = vld [vmem:[%s146_s1 + $0x8] sm:$0xff]  ;;  %v20_v3 = vld [vmem:[%s146_s1 + $0x10] sm:$0xff]  ;;  %91 = vmatprep.mubr.msk.bf16.mxu0 %vm98_vm0, %v97_v0 }
   0x2   :  { %v22_v4 = vpack.c.bf16 %v19_v2, %v18_v1  ;;  %v21_v5 = vld [vmem:[%s146_s1 + $0x18] sm:$0xff]  ;;  %v15_v7 = vld [vmem:[%s147_s0] sm:$0xff]  ;;  %v16_v8 = vld [vmem:[%s147_s0 + $0x8] sm:$0xff] }
   0x3   :  { %v23_v6 = vpack.c.bf16 %v21_v5, %v20_v3  ;;  %v17_v9 = vpack.c.bf16 %v16_v8, %v15_v7  ;;  %v82_v10 = vld [vmem:[%s148_s2] ss:$0 sm:$0xff] }
   0x4   :  { %88 = vmatpush3.bf16.msra.mxu0 %v22_v4 }
   0x5   :  { %89 = vmatprep.subr.bf16.mxu0 %v97_v0 }
   0x8   :  { %90 = vmatpush3.bf16.msra.mxu0 %v23_v6 }
   0xb   :  { %92 = vmatmul.mubr.msk.bf16.vlgmr.msra.gmra.mrb[0].mxu0 %vm31_vm1, %v17_v9 }
  0xde   :  { %v69_v11 = vpop.f32.mrb[0].mxu0 }
  0xdf   :  { %v70_v12 = vadd.f32 %v82_v10, %v69_v11  ;;  %v93_v13 = vpop.f32.mrb[1].mxu0 }
  0xe0   :  { %v72_v14 = vpop.f32.mrb[2].mxu0 }
  0xe1   :  { %76 = vst [vmem:[%s149_s3] sm:$0xff] %v70_v12  ;;  %v73_v15 = vadd.f32 %v82_v10, %v72_v14  ;;  %v94_v16 = vpop.f32.mrb[3].mxu0 }
  0xe3   :  { %77 = vst [vmem:[%s149_s3 + $0x8] sm:$0xff] %v73_v15 }

</bundles_post_ra>
